<compile_context>
chip_gen: v7x
topology: tpu7x:2x2x1
jax: 0.10.0
libtpu: 0.0.40
codegen_flags: <defaults>
</compile_context>

<pallas_src>
import functools
import math

import jax
import jax.numpy as jnp
from jax import lax
from jax.experimental import pallas as pl
from jax.experimental.pallas import tpu as pltpu


EPS = 1e-5


def _rmsnorm(v, g):
    # v: (S, D) f32, g: (D,) f32
    ms = jnp.mean(v * v, axis=-1, keepdims=True)
    return v * lax.rsqrt(ms + EPS) * g


def transformer_block_kernel(
    x_ref, g1_ref, g2_ref,
    wqkv_ref, wo_ref, w13_ref, w2_ref,
    cos_ref, sin_ref,
    out_ref,
    *, n_heads: int,
):
    x = x_ref[0]                    # (S, D) f32
    S, D = x.shape
    hd = D // n_heads
    scale = 1.0 / math.sqrt(hd)

    g1 = g1_ref[0]                  # (D,)
    g2 = g2_ref[0]                  # (D,)
    cosf = cos_ref[...].astype(jnp.float32)   # (S, D)  bf16 table, f32 math
    sinf = sin_ref[...].astype(jnp.float32)   # (S, D)  signed: -sin @ even lanes, +sin @ odd

    # ---- sublayer 1: RMSNorm -> causal MHA (RoPE) -> +residual
    xn = _rmsnorm(x, g1).astype(jnp.bfloat16)
    qkv = jnp.dot(xn, wqkv_ref[...], preferred_element_type=jnp.float32)   # (S, 3D) f32
    q = qkv[:, :D]
    k = qkv[:, D:2 * D]
    v = qkv[:, 2 * D:]

    # interleaved RoPE: pair-swap via XLU rolls + parity select (no wrap issue: hd is even so
    # pairs never cross head/array boundaries after the select).
    lane = lax.broadcasted_iota(jnp.int32, (S, D), 1)
    is_even = (lane % 2) == 0

    def rope(t):
        nxt = pltpu.roll(t, shift=D - 1, axis=1)    # out[j] = t[j+1]
        prv = pltpu.roll(t, shift=1, axis=1)        # out[j] = t[j-1]
        return t * cosf + jnp.where(is_even, nxt, prv) * sinf

    q = (rope(q) * scale).astype(jnp.bfloat16)      # fold 1/sqrt(hd) into q once
    k = rope(k).astype(jnp.bfloat16)
    v = v.astype(jnp.bfloat16)

    # per-head QK^T (pure values), softmax batched across heads on the stacked (H*S, S) scores
    scores = [
        lax.dot_general(q[:, h * hd:(h + 1) * hd], k[:, h * hd:(h + 1) * hd],
                        (((1,), (1,)), ((), ())),
                        preferred_element_type=jnp.float32)                # (S, S) f32
        for h in range(n_heads)
    ]
    s_all = jnp.concatenate(scores, axis=0)                                # (H*S, S) f32
    row = lax.broadcasted_iota(jnp.int32, (n_heads * S, S), 0)
    col = lax.broadcasted_iota(jnp.int32, (n_heads * S, S), 1)
    causal = (row % S) >= col
    s_all = jnp.where(causal, s_all, -1e30)
    s_all = s_all - jnp.max(s_all, axis=-1, keepdims=True)
    p_all = jnp.exp(s_all)
    inv = pl.reciprocal(jnp.sum(p_all, axis=-1, keepdims=True), approx=True)
    p_all = p_all * inv                                                    # (H*S, S) f32

    # per-head P@V as values -> one lane-dense (S, D) concatenate -> single wo matmul
    ctx = [
        jnp.dot(p_all[h * S:(h + 1) * S, :].astype(jnp.bfloat16),
                v[:, h * hd:(h + 1) * hd],
                preferred_element_type=jnp.float32)                        # (S, hd) f32
        for h in range(n_heads)
    ]
    attn_in = jnp.concatenate(ctx, axis=-1).astype(jnp.bfloat16)           # (S, D) bf16
    attn = jnp.dot(attn_in, wo_ref[...], preferred_element_type=jnp.float32)
    x1 = attn + x

    # ---- sublayer 2: RMSNorm -> SwiGLU -> +residual
    xn2 = _rmsnorm(x1, g2).astype(jnp.bfloat16)
    ab = jnp.dot(xn2, w13_ref[...], preferred_element_type=jnp.float32)    # (S, 2F) f32
    ff_dim = ab.shape[-1] // 2
    a = ab[:, :ff_dim]
    b = ab[:, ff_dim:]
    sig = pl.reciprocal(1.0 + jnp.exp(-a), approx=True)                    # EUP, f32
    hidden = (a * sig * b).astype(jnp.bfloat16)
    ff = jnp.dot(hidden, w2_ref[...], preferred_element_type=jnp.float32)  # (S, D) f32

    out_ref[0] = (ff + x1).astype(out_ref.dtype)


def make_rope_tables(seq_len: int, head_dim: int, n_heads: int, theta: float):
    """Two (S, D) bf16 tables: cos and signed-sin (-sin at even lanes, +sin at odd lanes)."""
    pos = jnp.arange(seq_len, dtype=jnp.float32)                            # (S,)
    inv_freq = theta ** (-(jnp.arange(0, head_dim, 2, dtype=jnp.float32) / head_dim))
    ang = pos[:, None] * inv_freq[None, :]                                  # (S, hd/2)
    cos = jnp.repeat(jnp.cos(ang), 2, axis=-1)                              # (S, hd)
    sin = jnp.repeat(jnp.sin(ang), 2, axis=-1)                              # (S, hd)
    idx = jnp.arange(head_dim)
    sign = jnp.where(idx % 2 == 0, -1.0, 1.0)[None, :]
    sin_signed = sin * sign
    tile = lambda t: jnp.tile(t, (1, n_heads)).astype(jnp.bfloat16)         # (S, D)
    return tile(cos), tile(sin_signed)


def transformer_block(x, params, *, n_heads: int, theta: float):
    B, S, D = x.shape
    F = params["w1"].shape[1]
    hd = D // n_heads
    assert hd % 2 == 0, "RoPE needs an even head_dim"
    cos, sin = make_rope_tables(S, hd, n_heads, theta)

    # Fuse + cast weights once in the wrapper (halves weight DMA / VMEM).
    wqkv = jnp.concatenate([params["wq"], params["wk"], params["wv"]],
                           axis=1).astype(jnp.bfloat16)                     # (D, 3D)
    w13 = jnp.concatenate([params["w1"], params["w3"]],
                          axis=1).astype(jnp.bfloat16)                      # (D, 2F)
    wo = params["wo"].astype(jnp.bfloat16)                                  # (D, D)
    w2 = params["w2"].astype(jnp.bfloat16)                                  # (F, D)
    g1 = params["g1"][None, :]
    g2 = params["g2"][None, :]

    full2d = lambda shape: pl.BlockSpec(shape, lambda b: (0, 0))
    # TODO(synk): once pipeline_mode=pl.Buffered(1) is verified on the target jax version, use
    # it on every constant-index block below to drop the wasted second pipeline buffer.
    in_specs = [
        pl.BlockSpec((1, S, D), lambda b: (b, 0, 0)),   # x
        full2d((1, D)),                                 # g1
        full2d((1, D)),                                 # g2
        full2d((D, 3 * D)),                             # wqkv
        full2d((D, D)),                                 # wo
        full2d((D, 2 * F)),                             # w13
        full2d((F, D)),                                 # w2
        full2d((S, D)),                                 # cos (bf16)
        full2d((S, D)),                                 # signed sin (bf16)
    ]
    out_spec = pl.BlockSpec((1, S, D), lambda b: (b, 0, 0))

    # explicit scoped-VMEM limit: double-buffered block footprint + headroom for intermediates
    nbytes = lambda a: int(a.size) * a.dtype.itemsize
    block_bytes = (
        2 * S * D * 4                                          # x block in + out block (f32)
        + nbytes(g1) + nbytes(g2)
        + nbytes(wqkv) + nbytes(wo) + nbytes(w13) + nbytes(w2)
        + nbytes(cos) + nbytes(sin)
    )
    vmem_limit = int(min(64 << 20, 2 * block_bytes + (8 << 20)))

    kernel = functools.partial(transformer_block_kernel, n_heads=n_heads)
    return pl.pallas_call(
        kernel,
        out_shape=jax.ShapeDtypeStruct((B, S, D), jnp.float32),
        grid_spec=pltpu.PrefetchScalarGridSpec(
            num_scalar_prefetch=0,
            grid=(B,),
            in_specs=in_specs,
            out_specs=out_spec,
        ),
        compiler_params=pltpu.CompilerParams(
            dimension_semantics=("parallel",),
            vmem_limit_bytes=vmem_limit,
        ),
    )(x, g1, g2, wqkv, wo, w13, w2, cos, sin)


def transformer_block_ref(x, params, *, n_heads: int, theta: float):
    """Pure-JAX f32 reference with identical math, for a sanity check."""
    B, S, D = x.shape
    hd = D // n_heads
    pos = jnp.arange(S, dtype=jnp.float32)
    inv_freq = theta ** (-(jnp.arange(0, hd, 2, dtype=jnp.float32) / hd))
    ang = pos[:, None] * inv_freq[None, :]
    c, s = jnp.cos(ang), jnp.sin(ang)                                       # (S, hd/2)

    def rms(v, g):
        return v * lax.rsqrt(jnp.mean(v * v, -1, keepdims=True) + EPS) * g

    def rope(t):                                                            # (S, hd)
        t2 = t.reshape(S, hd // 2, 2)
        x0, x1 = t2[..., 0], t2[..., 1]
        return jnp.stack([x0 * c - x1 * s, x1 * c + x0 * s], axis=-1).reshape(S, hd)

    def one(xb):
        xn = rms(xb, params["g1"])
        q = xn @ params["wq"]; k = xn @ params["wk"]; v = xn @ params["wv"]
        causal = jnp.arange(S)[:, None] >= jnp.arange(S)[None, :]
        acc = jnp.zeros((S, D), jnp.float32)
        for h in range(n_heads):
            lo = h * hd
            qh, kh, vh = (t[:, lo:lo + hd] for t in (q, k, v))
            qh, kh = rope(qh), rope(kh)
            sc = (qh @ kh.T) / math.sqrt(hd)
            sc = jnp.where(causal, sc, -1e30)
            p = jax.nn.softmax(sc, axis=-1)
            acc = acc.at[:, lo:lo + hd].set(p @ vh)
        x1 = acc @ params["wo"] + xb
        xn2 = rms(x1, params["g2"])
        a = xn2 @ params["w1"]; b = xn2 @ params["w3"]
        return (a * jax.nn.sigmoid(a) * b) @ params["w2"] + x1

    return jax.vmap(one)(x)


if __name__ == "__main__":
    # small shapes consistent with the module (D chosen lane-aligned = 128)
    B, S, d_model, n_heads, d_ff = 2, 8, 128, 4, 256
    max_seq_len, theta = 16, 10000.0
    assert S <= max_seq_len

    key = jax.random.PRNGKey(0)
    keys = jax.random.split(key, 8)
    params = {
        "g1": jnp.ones((d_model,), jnp.float32),          # RMSNorm gains (default init)
        "g2": jnp.ones((d_model,), jnp.float32),
        "wq": 0.02 * jax.random.normal(keys[0], (d_model, d_model), jnp.float32),
        "wk": 0.02 * jax.random.normal(keys[1], (d_model, d_model), jnp.float32),
        "wv": 0.02 * jax.random.normal(keys[2], (d_model, d_model), jnp.float32),
        "wo": 0.02 * jax.random.normal(keys[3], (d_model, d_model), jnp.float32),
        "w1": 0.02 * jax.random.normal(keys[4], (d_model, d_ff), jnp.float32),
        "w3": 0.02 * jax.random.normal(keys[5], (d_model, d_ff), jnp.float32),
        "w2": 0.02 * jax.random.normal(keys[6], (d_ff, d_model), jnp.float32),
    }
    x = jax.random.normal(keys[7], (B, S, d_model), jnp.float32)

    out = transformer_block(x, params, n_heads=n_heads, theta=theta)
    out = jax.block_until_ready(out)

    ref = transformer_block_ref(x, params, n_heads=n_heads, theta=theta)
    assert out.shape == (B, S, d_model)
    # bf16 MXU operands + bf16 RoPE tables + approx reciprocals -> loose tolerance vs f32 ref
    assert jnp.allclose(out, ref, rtol=2e-2, atol=2e-2), "mismatch vs pure-JAX reference"

    print("KERNEL_OK")
</pallas_src>

<mosaic_0001>
module attributes {stable_mosaic.version = 11 : i64} {
  func.func @transformer_block_kernel(%arg0: i32, %arg1: memref<1x8x128xf32, #tpu.memory_space<vmem>>, %arg2: memref<1x128xf32, #tpu.memory_space<vmem>>, %arg3: memref<1x128xf32, #tpu.memory_space<vmem>>, %arg4: memref<128x384xbf16, #tpu.memory_space<vmem>>, %arg5: memref<128x128xbf16, #tpu.memory_space<vmem>>, %arg6: memref<128x512xbf16, #tpu.memory_space<vmem>>, %arg7: memref<256x128xbf16, #tpu.memory_space<vmem>>, %arg8: memref<8x128xbf16, #tpu.memory_space<vmem>>, %arg9: memref<8x128xbf16, #tpu.memory_space<vmem>>, %arg10: memref<1x8x128xf32, #tpu.memory_space<vmem>>) attributes {dimension_semantics = [#tpu.dimension_semantics<parallel>], iteration_bounds = array<i64: 2>, scalar_prefetch = 0 : i64, scratch_operands = 0 : i64, tpu.core_type = #tpu.core_type<tc>, window_params = [{transform_indices = @transform_0, window_bounds = array<i64: 1, 8, 128>}, {pipeline_mode = #tpu.pipeline_mode<synchronous>, transform_indices = @transform_1, window_bounds = array<i64: 1, 128>}, {pipeline_mode = #tpu.pipeline_mode<synchronous>, transform_indices = @transform_2, window_bounds = array<i64: 1, 128>}, {pipeline_mode = #tpu.pipeline_mode<synchronous>, transform_indices = @transform_3, window_bounds = array<i64: 128, 384>}, {pipeline_mode = #tpu.pipeline_mode<synchronous>, transform_indices = @transform_4, window_bounds = array<i64: 128, 128>}, {pipeline_mode = #tpu.pipeline_mode<synchronous>, transform_indices = @transform_5, window_bounds = array<i64: 128, 512>}, {pipeline_mode = #tpu.pipeline_mode<synchronous>, transform_indices = @transform_6, window_bounds = array<i64: 256, 128>}, {pipeline_mode = #tpu.pipeline_mode<synchronous>, transform_indices = @transform_7, window_bounds = array<i64: 8, 128>}, {pipeline_mode = #tpu.pipeline_mode<synchronous>, transform_indices = @transform_8, window_bounds = array<i64: 8, 128>}, {transform_indices = @transform_9, window_bounds = array<i64: 1, 8, 128>}]} {
    %c0 = arith.constant 0 : index
    %c0_0 = arith.constant 0 : index
    %c0_1 = arith.constant 0 : index
    %0 = vector.load %arg1[%c0, %c0_0, %c0_1] : memref<1x8x128xf32, #tpu.memory_space<vmem>>, vector<1x8x128xf32>
    %1 = vector.shape_cast %0 : vector<1x8x128xf32> to vector<8x128xf32>
    %c0_2 = arith.constant 0 : index
    %c0_3 = arith.constant 0 : index
    %2 = vector.load %arg2[%c0_2, %c0_3] : memref<1x128xf32, #tpu.memory_space<vmem>>, vector<1x128xf32>
    %3 = vector.shape_cast %2 : vector<1x128xf32> to vector<128xf32>
    %c0_4 = arith.constant 0 : index
    %c0_5 = arith.constant 0 : index
    %4 = vector.load %arg3[%c0_4, %c0_5] : memref<1x128xf32, #tpu.memory_space<vmem>>, vector<1x128xf32>
    %5 = vector.shape_cast %4 : vector<1x128xf32> to vector<128xf32>
    %c0_6 = arith.constant 0 : index
    %c0_7 = arith.constant 0 : index
    %6 = vector.load %arg8[%c0_6, %c0_7] : memref<8x128xbf16, #tpu.memory_space<vmem>>, vector<8x128xbf16>
    %7 = arith.extf %6 : vector<8x128xbf16> to vector<8x128xf32>
    %c0_8 = arith.constant 0 : index
    %c0_9 = arith.constant 0 : index
    %8 = vector.load %arg9[%c0_8, %c0_9] : memref<8x128xbf16, #tpu.memory_space<vmem>>, vector<8x128xbf16>
    %9 = arith.extf %8 : vector<8x128xbf16> to vector<8x128xf32>
    %10 = arith.mulf %1, %1 : vector<8x128xf32>
    %cst = arith.constant dense<0.000000e+00> : vector<8xf32>
    %11 = vector.multi_reduction <add>, %10, %cst [1] : vector<8x128xf32> to vector<8xf32>
    %12 = vector.shape_cast %11 : vector<8xf32> to vector<8x1xf32>
    %cst_10 = arith.constant 1.280000e+02 : f32
    %13 = vector.broadcast %cst_10 : f32 to vector<8x1xf32>
    %14 = arith.divf %12, %13 : vector<8x1xf32>
    %cst_11 = arith.constant 9.99999974E-6 : f32
    %15 = vector.broadcast %cst_11 : f32 to vector<8x1xf32>
    %16 = arith.addf %14, %15 : vector<8x1xf32>
    %17 = math.rsqrt %16 : vector<8x1xf32>
    %18 = vector.broadcast %17 : vector<8x1xf32> to vector<8x128xf32>
    %19 = arith.mulf %1, %18 : vector<8x128xf32>
    %20 = vector.shape_cast %3 : vector<128xf32> to vector<1x128xf32>
    %21 = vector.broadcast %20 : vector<1x128xf32> to vector<8x128xf32>
    %22 = arith.mulf %19, %21 : vector<8x128xf32>
    %23 = arith.truncf %22 : vector<8x128xf32> to vector<8x128xbf16>
    %c0_12 = arith.constant 0 : index
    %c0_13 = arith.constant 0 : index
    %24 = vector.load %arg4[%c0_12, %c0_13] : memref<128x384xbf16, #tpu.memory_space<vmem>>, vector<128x384xbf16>
    %cst_14 = arith.constant dense<0.000000e+00> : vector<8x384xf32>
    %25 = tpu.matmul %23, %24, %cst_14 {dimension_numbers = #tpu.dot_dimension_numbers<[1], [0], [0], [1], [0, 0, 1, 1], [], []>} : vector<8x128xbf16>, vector<128x384xbf16>, vector<8x384xf32> -> vector<8x384xf32>
    %26 = vector.extract_strided_slice %25 {offsets = [0, 0], sizes = [8, 128], strides = [1, 1]} : vector<8x384xf32> to vector<8x128xf32>
    %27 = vector.extract_strided_slice %25 {offsets = [0, 128], sizes = [8, 128], strides = [1, 1]} : vector<8x384xf32> to vector<8x128xf32>
    %28 = vector.extract_strided_slice %25 {offsets = [0, 256], sizes = [8, 128], strides = [1, 1]} : vector<8x384xf32> to vector<8x128xf32>
    %29 = tpu.iota {dimensions = array<i32: 1>} : vector<8x128xi32>
    %c2_i32 = arith.constant 2 : i32
    %c0_i32 = arith.constant 0 : i32
    %30 = arith.cmpi eq, %c2_i32, %c0_i32 : i32
    %c1_i32 = arith.constant 1 : i32
    %31 = arith.select %30, %c1_i32, %c2_i32 : i32
    %32 = vector.broadcast %31 : i32 to vector<8x128xi32>
    %33 = arith.remsi %29, %32 : vector<8x128xi32>
    %c0_i32_15 = arith.constant 0 : i32
    %34 = vector.broadcast %c0_i32_15 : i32 to vector<8x128xi32>
    %35 = arith.cmpi ne, %33, %34 : vector<8x128xi32>
    %c0_i32_16 = arith.constant 0 : i32
    %36 = vector.broadcast %c0_i32_16 : i32 to vector<8x128xi32>
    %37 = arith.cmpi slt, %33, %36 : vector<8x128xi32>
    %c0_i32_17 = arith.constant 0 : i32
    %38 = arith.cmpi slt, %31, %c0_i32_17 : i32
    %39 = vector.broadcast %38 : i1 to vector<8x128xi1>
    %40 = vector.broadcast %39 : vector<8x128xi1> to vector<8x128xi1>
    %41 = arith.xori %37, %40 : vector<8x128xi1>
    %42 = arith.andi %41, %35 : vector<8x128xi1>
    %43 = vector.broadcast %31 : i32 to vector<8x128xi32>
    %44 = arith.addi %33, %43 : vector<8x128xi32>
    %45 = arith.select %42, %44, %33 : vector<8x128xi1>, vector<8x128xi32>
    %c0_i32_18 = arith.constant 0 : i32
    %46 = vector.broadcast %c0_i32_18 : i32 to vector<8x128xi32>
    %47 = arith.cmpi eq, %45, %46 : vector<8x128xi32>
    %c127_i32 = arith.constant 127 : i32
    %48 = tpu.dynamic_rotate %26 by %c127_i32 dim 1 : vector<8x128xf32>, i32 -> vector<8x128xf32>
    %c1_i32_19 = arith.constant 1 : i32
    %49 = tpu.dynamic_rotate %26 by %c1_i32_19 dim 1 : vector<8x128xf32>, i32 -> vector<8x128xf32>
    %50 = arith.mulf %26, %7 : vector<8x128xf32>
    %51 = arith.select %47, %48, %49 : vector<8x128xi1>, vector<8x128xf32>
    %52 = arith.mulf %51, %9 : vector<8x128xf32>
    %53 = arith.addf %50, %52 : vector<8x128xf32>
    %cst_20 = arith.constant 0.176776692 : f32
    %54 = vector.broadcast %cst_20 : f32 to vector<8x128xf32>
    %55 = arith.mulf %53, %54 : vector<8x128xf32>
    %56 = arith.truncf %55 : vector<8x128xf32> to vector<8x128xbf16>
    %c127_i32_21 = arith.constant 127 : i32
    %57 = tpu.dynamic_rotate %27 by %c127_i32_21 dim 1 : vector<8x128xf32>, i32 -> vector<8x128xf32>
    %c1_i32_22 = arith.constant 1 : i32
    %58 = tpu.dynamic_rotate %27 by %c1_i32_22 dim 1 : vector<8x128xf32>, i32 -> vector<8x128xf32>
    %59 = arith.mulf %27, %7 : vector<8x128xf32>
    %60 = arith.select %47, %57, %58 : vector<8x128xi1>, vector<8x128xf32>
    %61 = arith.mulf %60, %9 : vector<8x128xf32>
    %62 = arith.addf %59, %61 : vector<8x128xf32>
    %63 = arith.truncf %62 : vector<8x128xf32> to vector<8x128xbf16>
    %64 = arith.truncf %28 : vector<8x128xf32> to vector<8x128xbf16>
    %65 = vector.extract_strided_slice %56 {offsets = [0, 0], sizes = [8, 32], strides = [1, 1]} : vector<8x128xbf16> to vector<8x32xbf16>
    %66 = vector.extract_strided_slice %63 {offsets = [0, 0], sizes = [8, 32], strides = [1, 1]} : vector<8x128xbf16> to vector<8x32xbf16>
    %cst_23 = arith.constant dense<0.000000e+00> : vector<8x8xf32>
    %67 = tpu.matmul %65, %66, %cst_23 {dimension_numbers = #tpu.dot_dimension_numbers<[1], [1], [0], [0], [0, 0, 1, 0], [], []>} : vector<8x32xbf16>, vector<8x32xbf16>, vector<8x8xf32> -> vector<8x8xf32>
    %68 = vector.extract_strided_slice %56 {offsets = [0, 32], sizes = [8, 32], strides = [1, 1]} : vector<8x128xbf16> to vector<8x32xbf16>
    %69 = vector.extract_strided_slice %63 {offsets = [0, 32], sizes = [8, 32], strides = [1, 1]} : vector<8x128xbf16> to vector<8x32xbf16>
    %cst_24 = arith.constant dense<0.000000e+00> : vector<8x8xf32>
    %70 = tpu.matmul %68, %69, %cst_24 {dimension_numbers = #tpu.dot_dimension_numbers<[1], [1], [0], [0], [0, 0, 1, 0], [], []>} : vector<8x32xbf16>, vector<8x32xbf16>, vector<8x8xf32> -> vector<8x8xf32>
    %71 = vector.extract_strided_slice %56 {offsets = [0, 64], sizes = [8, 32], strides = [1, 1]} : vector<8x128xbf16> to vector<8x32xbf16>
    %72 = vector.extract_strided_slice %63 {offsets = [0, 64], sizes = [8, 32], strides = [1, 1]} : vector<8x128xbf16> to vector<8x32xbf16>
    %cst_25 = arith.constant dense<0.000000e+00> : vector<8x8xf32>
    %73 = tpu.matmul %71, %72, %cst_25 {dimension_numbers = #tpu.dot_dimension_numbers<[1], [1], [0], [0], [0, 0, 1, 0], [], []>} : vector<8x32xbf16>, vector<8x32xbf16>, vector<8x8xf32> -> vector<8x8xf32>
    %74 = vector.extract_strided_slice %56 {offsets = [0, 96], sizes = [8, 32], strides = [1, 1]} : vector<8x128xbf16> to vector<8x32xbf16>
    %75 = vector.extract_strided_slice %63 {offsets = [0, 96], sizes = [8, 32], strides = [1, 1]} : vector<8x128xbf16> to vector<8x32xbf16>
    %cst_26 = arith.constant dense<0.000000e+00> : vector<8x8xf32>
    %76 = tpu.matmul %74, %75, %cst_26 {dimension_numbers = #tpu.dot_dimension_numbers<[1], [1], [0], [0], [0, 0, 1, 0], [], []>} : vector<8x32xbf16>, vector<8x32xbf16>, vector<8x8xf32> -> vector<8x8xf32>
    %77 = tpu.concatenate %67, %70, %73, %76 in 0 : vector<8x8xf32>, vector<8x8xf32>, vector<8x8xf32>, vector<8x8xf32> -> vector<32x8xf32>
    %78 = tpu.iota {dimensions = array<i32: 0>} : vector<32x8xi32>
    %79 = tpu.iota {dimensions = array<i32: 1>} : vector<32x8xi32>
    %c8_i32 = arith.constant 8 : i32
    %c0_i32_27 = arith.constant 0 : i32
    %80 = arith.cmpi eq, %c8_i32, %c0_i32_27 : i32
    %c1_i32_28 = arith.constant 1 : i32
    %81 = arith.select %80, %c1_i32_28, %c8_i32 : i32
    %82 = vector.broadcast %81 : i32 to vector<32x8xi32>
    %83 = arith.remsi %78, %82 : vector<32x8xi32>
    %c0_i32_29 = arith.constant 0 : i32
    %84 = vector.broadcast %c0_i32_29 : i32 to vector<32x8xi32>
    %85 = arith.cmpi ne, %83, %84 : vector<32x8xi32>
    %c0_i32_30 = arith.constant 0 : i32
    %86 = vector.broadcast %c0_i32_30 : i32 to vector<32x8xi32>
    %87 = arith.cmpi slt, %83, %86 : vector<32x8xi32>
    %c0_i32_31 = arith.constant 0 : i32
    %88 = arith.cmpi slt, %81, %c0_i32_31 : i32
    %89 = vector.broadcast %88 : i1 to vector<32x8xi1>
    %90 = vector.broadcast %89 : vector<32x8xi1> to vector<32x8xi1>
    %91 = arith.xori %87, %90 : vector<32x8xi1>
    %92 = arith.andi %91, %85 : vector<32x8xi1>
    %93 = vector.broadcast %81 : i32 to vector<32x8xi32>
    %94 = arith.addi %83, %93 : vector<32x8xi32>
    %95 = arith.select %92, %94, %83 : vector<32x8xi1>, vector<32x8xi32>
    %96 = arith.cmpi sge, %95, %79 : vector<32x8xi32>
    %cst_32 = arith.constant -1.000000e+30 : f32
    %97 = vector.broadcast %cst_32 : f32 to vector<32x8xf32>
    %98 = arith.select %96, %77, %97 : vector<32x8xi1>, vector<32x8xf32>
    %cst_33 = arith.constant dense<0xFF800000> : vector<32xf32>
    %99 = vector.multi_reduction <maximumf>, %98, %cst_33 [1] : vector<32x8xf32> to vector<32xf32>
    %100 = vector.shape_cast %99 : vector<32xf32> to vector<32x1xf32>
    %101 = vector.broadcast %100 : vector<32x1xf32> to vector<32x8xf32>
    %102 = arith.subf %98, %101 : vector<32x8xf32>
    %103 = math.exp %102 : vector<32x8xf32>
    %cst_34 = arith.constant dense<0.000000e+00> : vector<32xf32>
    %104 = vector.multi_reduction <add>, %103, %cst_34 [1] : vector<32x8xf32> to vector<32xf32>
    %105 = vector.shape_cast %104 : vector<32xf32> to vector<32x1xf32>
    %106 = tpu.reciprocal %105 {approx = true} : vector<32x1xf32> -> vector<32x1xf32>
    %107 = vector.broadcast %106 : vector<32x1xf32> to vector<32x8xf32>
    %108 = arith.mulf %103, %107 : vector<32x8xf32>
    %109 = vector.extract_strided_slice %108 {offsets = [0, 0], sizes = [8, 8], strides = [1, 1]} : vector<32x8xf32> to vector<8x8xf32>
    %110 = arith.truncf %109 : vector<8x8xf32> to vector<8x8xbf16>
    %111 = vector.extract_strided_slice %64 {offsets = [0, 0], sizes = [8, 32], strides = [1, 1]} : vector<8x128xbf16> to vector<8x32xbf16>
    %cst_35 = arith.constant dense<0.000000e+00> : vector<8x32xf32>
    %112 = tpu.matmul %110, %111, %cst_35 {dimension_numbers = #tpu.dot_dimension_numbers<[1], [0], [0], [1], [0, 0, 1, 1], [], []>} : vector<8x8xbf16>, vector<8x32xbf16>, vector<8x32xf32> -> vector<8x32xf32>
    %113 = vector.extract_strided_slice %108 {offsets = [8, 0], sizes = [8, 8], strides = [1, 1]} : vector<32x8xf32> to vector<8x8xf32>
    %114 = arith.truncf %113 : vector<8x8xf32> to vector<8x8xbf16>
    %115 = vector.extract_strided_slice %64 {offsets = [0, 32], sizes = [8, 32], strides = [1, 1]} : vector<8x128xbf16> to vector<8x32xbf16>
    %cst_36 = arith.constant dense<0.000000e+00> : vector<8x32xf32>
    %116 = tpu.matmul %114, %115, %cst_36 {dimension_numbers = #tpu.dot_dimension_numbers<[1], [0], [0], [1], [0, 0, 1, 1], [], []>} : vector<8x8xbf16>, vector<8x32xbf16>, vector<8x32xf32> -> vector<8x32xf32>
    %117 = vector.extract_strided_slice %108 {offsets = [16, 0], sizes = [8, 8], strides = [1, 1]} : vector<32x8xf32> to vector<8x8xf32>
    %118 = arith.truncf %117 : vector<8x8xf32> to vector<8x8xbf16>
    %119 = vector.extract_strided_slice %64 {offsets = [0, 64], sizes = [8, 32], strides = [1, 1]} : vector<8x128xbf16> to vector<8x32xbf16>
    %cst_37 = arith.constant dense<0.000000e+00> : vector<8x32xf32>
    %120 = tpu.matmul %118, %119, %cst_37 {dimension_numbers = #tpu.dot_dimension_numbers<[1], [0], [0], [1], [0, 0, 1, 1], [], []>} : vector<8x8xbf16>, vector<8x32xbf16>, vector<8x32xf32> -> vector<8x32xf32>
    %121 = vector.extract_strided_slice %108 {offsets = [24, 0], sizes = [8, 8], strides = [1, 1]} : vector<32x8xf32> to vector<8x8xf32>
    %122 = arith.truncf %121 : vector<8x8xf32> to vector<8x8xbf16>
    %123 = vector.extract_strided_slice %64 {offsets = [0, 96], sizes = [8, 32], strides = [1, 1]} : vector<8x128xbf16> to vector<8x32xbf16>
    %cst_38 = arith.constant dense<0.000000e+00> : vector<8x32xf32>
    %124 = tpu.matmul %122, %123, %cst_38 {dimension_numbers = #tpu.dot_dimension_numbers<[1], [0], [0], [1], [0, 0, 1, 1], [], []>} : vector<8x8xbf16>, vector<8x32xbf16>, vector<8x32xf32> -> vector<8x32xf32>
    %125 = tpu.concatenate %112, %116, %120, %124 in 1 : vector<8x32xf32>, vector<8x32xf32>, vector<8x32xf32>, vector<8x32xf32> -> vector<8x128xf32>
    %126 = arith.truncf %125 : vector<8x128xf32> to vector<8x128xbf16>
    %c0_39 = arith.constant 0 : index
    %c0_40 = arith.constant 0 : index
    %127 = vector.load %arg5[%c0_39, %c0_40] : memref<128x128xbf16, #tpu.memory_space<vmem>>, vector<128x128xbf16>
    %cst_41 = arith.constant dense<0.000000e+00> : vector<8x128xf32>
    %128 = tpu.matmul %126, %127, %cst_41 {dimension_numbers = #tpu.dot_dimension_numbers<[1], [0], [0], [1], [0, 0, 1, 1], [], []>} : vector<8x128xbf16>, vector<128x128xbf16>, vector<8x128xf32> -> vector<8x128xf32>
    %129 = arith.addf %128, %1 : vector<8x128xf32>
    %130 = arith.mulf %129, %129 : vector<8x128xf32>
    %cst_42 = arith.constant dense<0.000000e+00> : vector<8xf32>
    %131 = vector.multi_reduction <add>, %130, %cst_42 [1] : vector<8x128xf32> to vector<8xf32>
    %132 = vector.shape_cast %131 : vector<8xf32> to vector<8x1xf32>
    %cst_43 = arith.constant 1.280000e+02 : f32
    %133 = vector.broadcast %cst_43 : f32 to vector<8x1xf32>
    %134 = arith.divf %132, %133 : vector<8x1xf32>
    %cst_44 = arith.constant 9.99999974E-6 : f32
    %135 = vector.broadcast %cst_44 : f32 to vector<8x1xf32>
    %136 = arith.addf %134, %135 : vector<8x1xf32>
    %137 = math.rsqrt %136 : vector<8x1xf32>
    %138 = vector.broadcast %137 : vector<8x1xf32> to vector<8x128xf32>
    %139 = arith.mulf %129, %138 : vector<8x128xf32>
    %140 = vector.shape_cast %5 : vector<128xf32> to vector<1x128xf32>
    %141 = vector.broadcast %140 : vector<1x128xf32> to vector<8x128xf32>
    %142 = arith.mulf %139, %141 : vector<8x128xf32>
    %143 = arith.truncf %142 : vector<8x128xf32> to vector<8x128xbf16>
    %c0_45 = arith.constant 0 : index
    %c0_46 = arith.constant 0 : index
    %144 = vector.load %arg6[%c0_45, %c0_46] : memref<128x512xbf16, #tpu.memory_space<vmem>>, vector<128x512xbf16>
    %cst_47 = arith.constant dense<0.000000e+00> : vector<8x512xf32>
    %145 = tpu.matmul %143, %144, %cst_47 {dimension_numbers = #tpu.dot_dimension_numbers<[1], [0], [0], [1], [0, 0, 1, 1], [], []>} : vector<8x128xbf16>, vector<128x512xbf16>, vector<8x512xf32> -> vector<8x512xf32>
    %146 = vector.extract_strided_slice %145 {offsets = [0, 0], sizes = [8, 256], strides = [1, 1]} : vector<8x512xf32> to vector<8x256xf32>
    %147 = vector.extract_strided_slice %145 {offsets = [0, 256], sizes = [8, 256], strides = [1, 1]} : vector<8x512xf32> to vector<8x256xf32>
    %cst_48 = arith.constant 0.000000e+00 : f32
    %148 = vector.broadcast %cst_48 : f32 to vector<8x256xf32>
    %149 = arith.subf %148, %146 : vector<8x256xf32>
    %150 = math.exp %149 : vector<8x256xf32>
    %cst_49 = arith.constant 1.000000e+00 : f32
    %151 = vector.broadcast %cst_49 : f32 to vector<8x256xf32>
    %152 = arith.addf %151, %150 : vector<8x256xf32>
    %153 = tpu.reciprocal %152 {approx = true} : vector<8x256xf32> -> vector<8x256xf32>
    %154 = arith.mulf %146, %153 : vector<8x256xf32>
    %155 = arith.mulf %154, %147 : vector<8x256xf32>
    %156 = arith.truncf %155 : vector<8x256xf32> to vector<8x256xbf16>
    %c0_50 = arith.constant 0 : index
    %c0_51 = arith.constant 0 : index
    %157 = vector.load %arg7[%c0_50, %c0_51] : memref<256x128xbf16, #tpu.memory_space<vmem>>, vector<256x128xbf16>
    %cst_52 = arith.constant dense<0.000000e+00> : vector<8x128xf32>
    %158 = tpu.matmul %156, %157, %cst_52 {dimension_numbers = #tpu.dot_dimension_numbers<[1], [0], [0], [1], [0, 0, 1, 1], [], []>} : vector<8x256xbf16>, vector<256x128xbf16>, vector<8x128xf32> -> vector<8x128xf32>
    %159 = arith.addf %158, %129 : vector<8x128xf32>
    %c0_53 = arith.constant 0 : index
    %c0_54 = arith.constant 0 : index
    %c0_55 = arith.constant 0 : index
    %160 = vector.load %arg10[%c0_53, %c0_54, %c0_55] : memref<1x8x128xf32, #tpu.memory_space<vmem>>, vector<1x8x128xf32>
    %161 = vector.shape_cast %160 : vector<1x8x128xf32> to vector<8x128xf32>
    %162 = vector.shape_cast %159 : vector<8x128xf32> to vector<1x8x128xf32>
    tpu.vector_store %arg10[%c0_53, %c0_54, %c0_55], %162 {strides = array<i32>} : memref<1x8x128xf32, #tpu.memory_space<vmem>>, vector<1x8x128xf32>,
    return
  }
  func.func @transform_0(%arg0: i32) -> (i32, i32, i32) {
    %c0_i32 = arith.constant 0 : i32
    %c0_i32_0 = arith.constant 0 : i32
    %c0_i32_1 = arith.constant 0 : i32
    return %arg0, %c0_i32, %c0_i32_0 : i32, i32, i32
  }
  func.func @transform_1(%arg0: i32) -> (i32, i32) {
    %c0_i32 = arith.constant 0 : i32
    %c0_i32_0 = arith.constant 0 : i32
    %c0_i32_1 = arith.constant 0 : i32
    return %c0_i32, %c0_i32_0 : i32, i32
  }
  func.func @transform_2(%arg0: i32) -> (i32, i32) {
    %c0_i32 = arith.constant 0 : i32
    %c0_i32_0 = arith.constant 0 : i32
    %c0_i32_1 = arith.constant 0 : i32
    return %c0_i32, %c0_i32_0 : i32, i32
  }
  func.func @transform_3(%arg0: i32) -> (i32, i32) {
    %c0_i32 = arith.constant 0 : i32
    %c0_i32_0 = arith.constant 0 : i32
    %c0_i32_1 = arith.constant 0 : i32
    return %c0_i32, %c0_i32_0 : i32, i32
  }
  func.func @transform_4(%arg0: i32) -> (i32, i32) {
    %c0_i32 = arith.constant 0 : i32
    %c0_i32_0 = arith.constant 0 : i32
    %c0_i32_1 = arith.constant 0 : i32
    return %c0_i32, %c0_i32_0 : i32, i32
  }
  func.func @transform_5(%arg0: i32) -> (i32, i32) {
    %c0_i32 = arith.constant 0 : i32
    %c0_i32_0 = arith.constant 0 : i32
    %c0_i32_1 = arith.constant 0 : i32
    return %c0_i32, %c0_i32_0 : i32, i32
  }
  func.func @transform_6(%arg0: i32) -> (i32, i32) {
    %c0_i32 = arith.constant 0 : i32
    %c0_i32_0 = arith.constant 0 : i32
    %c0_i32_1 = arith.constant 0 : i32
    return %c0_i32, %c0_i32_0 : i32, i32
  }
  func.func @transform_7(%arg0: i32) -> (i32, i32) {
    %c0_i32 = arith.constant 0 : i32
    %c0_i32_0 = arith.constant 0 : i32
    %c0_i32_1 = arith.constant 0 : i32
    return %c0_i32, %c0_i32_0 : i32, i32
  }
  func.func @transform_8(%arg0: i32) -> (i32, i32) {
    %c0_i32 = arith.constant 0 : i32
    %c0_i32_0 = arith.constant 0 : i32
    %c0_i32_1 = arith.constant 0 : i32
    return %c0_i32, %c0_i32_0 : i32, i32
  }
  func.func @transform_9(%arg0: i32) -> (i32, i32, i32) {
    %c0_i32 = arith.constant 0 : i32
    %c0_i32_0 = arith.constant 0 : i32
    %c0_i32_1 = arith.constant 0 : i32
    return %arg0, %c0_i32, %c0_i32_0 : i32, i32, i32
  }
}

</mosaic_0001>

<bundles_post_ra>
// kernel: tpu_custom_call.1
= control target key start
LH: loop header
LB: loop body
LE: loop exit
PB: predicated region body
PF: predicated region fallthrough
CT: control target
= control target key end

     0   :  { %s3111_s0 = inlined_call_operand.hbm [shape: f32[2,8,128], index: 0, kind: input, shape index: {}]   ;;  %s3112_s1 = inlined_call_operand.vmem [shape: f32[1,128], index: 1, kind: input, shape index: {}]   ;;  %s3113_s2 = inlined_call_operand.vmem [shape: f32[1,128], index: 2, kind: input, shape index: {}]   ;;  %s3114_s3 = inlined_call_operand.hbm [shape: bf16[128,384], index: 3, kind: input, shape index: {}]   ;;  %s3115_s4 = inlined_call_operand.hbm [shape: bf16[128,128], index: 4, kind: input, shape index: {}]   ;;  %s3116_s5 = inlined_call_operand.hbm [shape: bf16[128,512], index: 5, kind: input, shape index: {}]   ;;  %s3117_s6 = inlined_call_operand.hbm [shape: bf16[256,128], index: 6, kind: input, shape index: {}]   ;;  %s3118_s7 = inlined_call_operand.vmem [shape: bf16[8,128], index: 7, kind: input, shape index: {}]   ;;  %s3119_s8 = inlined_call_operand.vmem [shape: bf16[8,128], index: 8, kind: input, shape index: {}]   ;;  %s3120_s9 = inlined_call_operand.hbm [shape: f32[2,8,128], index: 9, kind: output, shape index: {}]  }
   0x1   :  { %3125 = sst [smem:[#allocation16_spill]] %s3114_s3 }
   0x2   :  { %3126 = sst [smem:[#allocation17_spill]] %s3120_s9 }
   0x3   :  { %14 = vsyncpa [#allocation3], 0 }
   0x4   :  { %16 = vsyncpa [#allocation3 + $0x1], 0 }
   0x5   :  { %17 = vsyncpa [#allocation6], 0 }
   0x6   :  { %18 = vsyncpa [#allocation9], 0 }
   0x7   :  { %19 = vsyncpa [#allocation4], 0 }
   0x8   :  { %21 = vsyncpa [#allocation4 + $0x1], 0  ;;  %s2700_s30 = smov 0   ;;  %s2702_s10 = smov 0  }
   0x9   :  { %s2704_s11 = smov 0   ;;  %s2706_s12 = smov 0  }
   0xa LB: > { %s2630_s13 = smov [#allocation5]   ;;  %s2721_s15 = sadd.s32 4294967295, %s2628_s12   ;;  %s2628_s12 = sphi %s2706_s12, %s3151_s12   ;;  %s2624_s11 = sphi %s2704_s11, %s3150_s11   ;;  %s2620_s10 = sphi %s2702_s10, %s3149_s10   ;;  %s2616_s30 = sphi %s2700_s30, %s3148_s30  }
   0xb   : > { %s270_s14 = sshll.u32 %s2630_s13, 4  ;;  %p1926_p0 = scmp.ge.s32.totalorder %s2628_s12, 1  ;;  %s2726_s14 = int_to_ptr.vmem [resolvable:$true] %s270_s14 }
   0xc   : > { %p3122_p1 = scmp.eq.s32.totalorder %s2721_s15, 0  ;;  %p252_p2 = scmp.lt.s32.totalorder %s2628_s12, 3 }
   0xd   : > { %s2631_s17 = smov [#allocation8]   ;;  %s2632_s20 = smov [#allocation7]  }
   0xe   : > { %p2728_p3 = pnand %p1926_p0, %p252_p2  ;;  %s296_s18 = sshll.u32 %s2631_s17, 4  ;;  %s2741_s18 = int_to_ptr.vmem [resolvable:$true] %s296_s18 }
   0xf   : > { %s2743_s21 = sshll.u32 %s2632_s20, 4  ;;  %s3129_s3 = sld [smem:[#allocation16_spill]]  ;;  %s284_s21 = int_to_ptr.vmem [resolvable:$true] %s2743_s21 }
  0x10   : > { %s3127_s16 = scalar_select %p2728_p3, 1, 0 }
  0x11   : > { %p2199_p5 = pneg %p2728_p3 }
  0x13   : > { %p2737_p6 = pnand %p2199_p5, %p3122_p1 }
  0x15   : > { %s2412_s24 = scalar_lea.hbm %s3129_s3, 3072  ;;  %p2753_p8 = pneg %p2737_p6 }
  0x16   : > { %p2413_p7 = scmp.ne.s32.totalorder %s3129_s3, %s2412_s24  ;;  %p2419_p11 = scmp.lt.u32.totalorder %s2412_s24, %s3129_s3 }
  0x18   : > { %p2415_p9 = pnand %p2753_p8, %p2413_p7 }
  0x1a   : > { %p2416_p10 = pneg %p2415_p9 }
  0x1c   : > { %p2421_p12 = pnand %p2419_p11, %p2416_p10 }
  0x1e   : > { %2424 = shalt.err (!%p2421_p12)
}
  0x1f   : > { %s2425_s13 = scalar_lea.vmem %s2726_s14, 3072  ;;  %p2433_p5 = scmp.lt.s32.totalorder %s2726_s14, %s2726_s14 }
  0x20   : > { %p2426_p13 = scmp.ne.s32.totalorder %s2726_s14, %s2425_s13  ;;  %p2434_p4 = scmp.lt.s32.totalorder %s2425_s13, %s2425_s13 }
  0x22   : > { %p2428_p0 = pnand %p2426_p13, %p2753_p8  ;;  %p2435_p7 = por %p2434_p4, %p2433_p5 }
  0x24   : > { %p2429_p2 = pneg %p2428_p0 }
  0x26   : > { %p2436_p9 = pnand %p2435_p7, %p2429_p2 }
  0x28   : > { %2439 = shalt.err (!%p2436_p9)
}
  0x29   : > { %s2633_s17 = smov 192   ;;  %s2634_s20 = smov 12  }
  0x2a   : > { %2202 = dma.hbm_to_vmem [thread:$0]  (!%p2737_p6), %s3129_s3, 3072, %s2726_s14, [#allocation6], %s2633_s17, %s2633_s17, %s2634_s20  }
  0x2b   : > { %s2440_s26 = scalar_lea.hbm %s3116_s5, 4096 }
  0x2c   : > { %p2441_p4 = scmp.ne.s32.totalorder %s3116_s5, %s2440_s26  ;;  %p2447_p12 = scmp.lt.u32.totalorder %s2440_s26, %s3116_s5 }
  0x2e   : > { %p2443_p10 = pnand %p2441_p4, %p2753_p8 }
  0x30   : > { %p2444_p11 = pneg %p2443_p10 }
  0x32   : > { %p2449_p13 = pnand %p2447_p12, %p2444_p11 }
  0x34   : > { %2452 = shalt.err (!%p2449_p13)
}
  0x35   : > { %s2453_s14 = scalar_lea.vmem %s2741_s18, 4096  ;;  %p2461_p7 = scmp.lt.s32.totalorder %s2741_s18, %s2741_s18 }
  0x36   : > { %p2454_p0 = scmp.ne.s32.totalorder %s2741_s18, %s2453_s14  ;;  %p2462_p9 = scmp.lt.s32.totalorder %s2453_s14, %s2453_s14 }
  0x38   : > { %p2456_p2 = pnand %p2454_p0, %p2753_p8  ;;  %p2463_p4 = por %p2462_p9, %p2461_p7 }
  0x3a   : > { %p2457_p5 = pneg %p2456_p2 }
  0x3c   : > { %p2464_p10 = pnand %p2463_p4, %p2457_p5 }
  0x3e   : > { %2467 = shalt.err (!%p2464_p10)
}
  0x3f   : > { %s2635_s17 = smov 256   ;;  %s2636_s9 = smov 16  }
  0x40   : > { %2208 = dma.hbm_to_vmem [thread:$0]  (!%p2737_p6), %s3116_s5, 4096, %s2741_s18, [#allocation9], %s2635_s17, %s2635_s17, %s2636_s9  }
  0x41   : > { %s2468_s25 = scalar_lea.hbm %s3115_s4, 1024 }
  0x42   : > { %p2469_p11 = scmp.ne.s32.totalorder %s3115_s4, %s2468_s25  ;;  %p2475_p0 = scmp.lt.u32.totalorder %s2468_s25, %s3115_s4 }
  0x44   : > { %p2471_p12 = pnand %p2469_p11, %p2753_p8 }
  0x46   : > { %p2472_p13 = pneg %p2471_p12 }
  0x48   : > { %p2477_p2 = pnand %p2475_p0, %p2472_p13 }
  0x4a   : > { %2480 = shalt.err (!%p2477_p2)
}
  0x4b   : > { %s2481_s14 = scalar_lea.vmem %s284_s21, 1024  ;;  %p2489_p4 = scmp.lt.s32.totalorder %s284_s21, %s284_s21 }
  0x4c   : > { %p2482_p5 = scmp.ne.s32.totalorder %s284_s21, %s2481_s14  ;;  %p2490_p10 = scmp.lt.s32.totalorder %s2481_s14, %s2481_s14 }
  0x4e   : > { %p2484_p7 = pnand %p2482_p5, %p2753_p8  ;;  %p2491_p1 = por %p2490_p10, %p2489_p4 }
  0x50   : > { %p2485_p9 = pneg %p2484_p7 }
  0x52   : > { %p2492_p3 = pnand %p2491_p1, %p2485_p9 }
  0x54   : > { %2495 = shalt.err (!%p2492_p3)
}
  0x55   : > { %s2637_s18 = smov 64   ;;  %s2638_s17 = smov 4  }
  0x56   : > { %2205 = dma.hbm_to_vmem [thread:$0]  (!%p2737_p6), %s3115_s4, 1024, %s284_s21, [#allocation6], %s2637_s18, %s2637_s18, %s2638_s17  }
  0x57   : > { %s2639_s22 = smov [#allocation10]   ;;  %s2496_s26 = scalar_lea.hbm %s3117_s6, 2048 }
  0x58   : > { %s309_s23 = sshll.u32 %s2639_s22, 4  ;;  %p2497_p1 = scmp.ne.s32.totalorder %s3117_s6, %s2496_s26  ;;  %s310_s23 = int_to_ptr.vmem [resolvable:$true] %s309_s23 }
  0x59   : > { %p2503_p12 = scmp.lt.u32.totalorder %s2496_s26, %s3117_s6 }
  0x5a   : > { %p2499_p3 = pnand %p2497_p1, %p2753_p8 }
  0x5c   : > { %p2500_p11 = pneg %p2499_p3 }
  0x5e   : > { %p2505_p13 = pnand %p2503_p12, %p2500_p11 }
  0x60   : > { %2508 = shalt.err (!%p2505_p13)
}
  0x61   : > { %s2509_s21 = scalar_lea.vmem %s310_s23, 2048  ;;  %p2517_p7 = scmp.lt.s32.totalorder %s310_s23, %s310_s23 }
  0x62   : > { %p2510_p0 = scmp.ne.s32.totalorder %s310_s23, %s2509_s21  ;;  %p2518_p9 = scmp.lt.s32.totalorder %s2509_s21, %s2509_s21 }
  0x64   : > { %p2512_p2 = pnand %p2510_p0, %p2753_p8  ;;  %p2519_p4 = por %p2518_p9, %p2517_p7 }
  0x66   : > { %p2513_p5 = pneg %p2512_p2 }
  0x68   : > { %p2520_p10 = pnand %p2519_p4, %p2513_p5 }
  0x6a   : > { %2523 = shalt.err (!%p2520_p10)
}
  0x6b   : > { %2211 = dma.hbm_to_vmem [thread:$0]  (!%p2737_p6), %s3117_s6, 2048, %s310_s23, [#allocation9], %s2637_s18, %s2637_s18, %s2638_s17  }
  0x6c   : > { %s1925_s27 = sadd.s32 4294967294, %s2628_s12   ;;  %s2836_s19 = sadd.s32 1, %s2628_s12  }
  0x6d   : > { %s31_s22 = ssub.s32 %s2628_s12, %s2836_s19  ;;  %s34_s24 = sadd.s32 1, %s2624_s11 }
  0x6e   : > { %p32_p8 = scmp.eq.s32.totalorder %s31_s22, 0  ;;  %p41_p1 = scmp.ne.s32.totalorder %s2624_s11, %s2620_s10 }
  0x6f   : > { %p42_p3 = scmp.eq.s32.totalorder %s2628_s12, 0  ;;  %p47_p11 = scmp.ne.s32.totalorder %s2620_s10, %s2616_s30 }
  0x70   : > { %s2847_s25 = scalar_select %p32_p8, %s2624_s11, %s34_s24  }
  0x71   : > { %p2849_p12 = por %p42_p3, %p41_p1  ;;  %p3132_p13 = scmp.eq.s32.totalorder %s2721_s15, 0 }
  0x72   : > { %p239_p0 = scmp.eq.s32.totalorder %s2721_s15, 1  ;;  %p245_p2 = scmp.eq.s32.totalorder %s1925_s27, 1 }
  0x73   : > { %p2855_p6 = por %p3132_p13, %p47_p11  ;;  %p2224_p5 = scmp.lt.s32.totalorder %s2628_s12, 2 }
  0x74   : > { %s329_s17 = sand.u32 1, %s2624_s11   ;;  %p2862_p7 = por %p239_p0, %p41_p1 }
  0x75   : > { %p2866_p9 = por %p245_p2, %p47_p11  ;;  %s1932_s29 = sshll.u32 %s329_s17, 3 }
  0x76   : > { %s3134_s23 = scalar_select %p2862_p7, 1, 0 }
  0x77   : > { %s3135_s28 = scalar_select %p2866_p9, 1, 0 }
  0x78   : > { %s1933_s13 = sshll.u32 %s2628_s12, 7  ;;  %s333_s20 = scalar_lea.vmem [#allocation2], %s1932_s29 }
  0x79   : > { %s2874_s9 = scalar_lea.hbm %s3111_s0, %s1933_s13  ;;  %s340_s27 = sshll.u32 %s333_s20, 4  ;;  %s2876_s27 = int_to_ptr.vmem [resolvable:$true] %s340_s27 }
  0x7a   : > { %p2880_p4 = pnand %p2224_p5, %p2849_p12  ;;  %s330_s24 = scalar_lea.sflag [#allocation3], %s329_s17 }
  0x7b   : > { %s2524_s3 = scalar_lea.hbm %s2874_s9, 128  ;;  %s2529_s14 = scalar_lea.hbm %s3111_s0, 256 }
  0x7c   : > { %p2525_p10 = scmp.ne.s32.totalorder %s2874_s9, %s2524_s3  ;;  %p2526_p8 = pneg %p2880_p4 }
  0x7d   : > { %p2530_p11 = scmp.lt.u32.totalorder %s2874_s9, %s3111_s0  ;;  %p2531_p12 = scmp.lt.u32.totalorder %s2529_s14, %s2524_s3 }
  0x7e   : > { %p2527_p1 = pnand %p2526_p8, %p2525_p10  ;;  %p2533_p0 = scmp.lt.u32.totalorder %s2524_s3, %s2874_s9 }
  0x7f   : > { %p2532_p13 = por %p2531_p12, %p2530_p11 }
  0x80   : > { %p2528_p3 = pneg %p2527_p1 }
  0x81   : > { %p2534_p2 = por %p2533_p0, %p2532_p13 }
  0x83   : > { %p2535_p5 = pnand %p2534_p2, %p2528_p3 }
  0x85   : > { %2538 = shalt.err (!%p2535_p5)
}
  0x86   : > { %s2539_s17 = scalar_lea.vmem %s2876_s27, 128  ;;  %s2640_s20 = smov [#allocation2]  }
  0x87   : > { %p2540_p10 = scmp.ne.s32.totalorder %s2876_s27, %s2539_s17  ;;  %s2544_s29 = sshll.u32 %s2640_s20, 4  ;;  %s2545_s29 = int_to_ptr.vmem [resolvable:$false] %s2544_s29 }
  0x88   : > { %s2546_s13 = scalar_lea.vmem %s2545_s29, 256  ;;  %p2547_p7 = scmp.lt.s32.totalorder %s2876_s27, %s2545_s29 }
  0x89   : > { %p2542_p1 = pnand %p2540_p10, %p2526_p8  ;;  %p2548_p11 = scmp.lt.s32.totalorder %s2546_s13, %s2539_s17 }
  0x8b   : > { %p2543_p9 = pneg %p2542_p1  ;;  %p2549_p12 = por %p2548_p11, %p2547_p7 }
  0x8d   : > { %p2550_p13 = pnand %p2549_p12, %p2543_p9 }
  0x8f   : > { %2553 = shalt.err (!%p2550_p13)
}
  0x90   : > { %2215 = dma.hbm_to_vmem [thread:$0]  (!%p2880_p4), %s2874_s9, 128, %s2876_s27, %s330_s24  }
  0x91   : > { %p3137_p3 = scmp.ne.s32.totalorder %s3127_s16, 0 }
  0x92   : > { %s2912_s3 = sand.u32 (!%p3137_p3), 1, %s2620_s10  }
  0x93   : > { %349 = sbr.rel (%p3137_p3) target bundleno = 2516 (0x9d4), region = 56  ;;  %s1935_s14 = sshll.u32 (!%p3137_p3), %s2912_s3, 3 }
  0x94   : > { %s352_s26 = scalar_lea.sflag (!%p3137_p3), [#allocation3], %s2912_s3  ;;  %s355_s21 = scalar_lea.vmem (!%p3137_p3), [#allocation2], %s1935_s14 }
  0x9a   : > { %2599 = dma.done.wait (%p2855_p6), %s352_s26, 128  }
  0x9b   : > { %2601 = vsyncadd (%p2855_p6), %s352_s26, 4294967168  ;;  %p3138_p7 = scmp.eq.s32.totalorder %s2721_s15, 0 }
  0x9d   : > { %2603 = dma.done.wait (%p3138_p7), [#allocation6], 4096   ;;  %p3139_p9 = pmov %p3138_p7 }
  0x9e   : > { %p3140_p4 = pmov %p3138_p7 }
  0x9f   : > { %2605 = vsyncadd (%p3139_p9), [#allocation6], 4294963200 }
  0xa0   : > { %2607 = dma.done.wait (%p3140_p4), [#allocation9], 6144   ;;  %p3141_p8 = pmov %p3140_p4 }
  0xa1   : > { %v2641_v0 = vmov 0.0   ;;  %v2931_v1 = vld [vmem:[%s355_s21] sm:$0xff]  ;;  %v2282_v4 = vld [vmem:[#allocation5] ss:$12 sps:$4 sm:$0xff]   ;;  %v2642_v24 = vmov 0   ;;  %vm2643_vm0 = vmmov 0   ;;  %v671_v44 = vlaneseq }
  0xa2   : > { %2609 = vsyncadd (%p3141_p8), [#allocation9], 4294961152  ;;  %2091 = vmatprep.subr.bf16.mxu1 %v2641_v0  ;;  %v414_v2 = vmul.f32 %v2931_v1, %v2931_v1  ;;  %v2280_v3 = vld [vmem:[#allocation5 + $0x4] ss:$12 sps:$4 sm:$0xff]   ;;  %v2283_v5 = vld [vmem:[#allocation5 + $0x8] ss:$12 sps:$4 sm:$0xff]   ;;  %622 = vmatprep.mubr.bf16.mxu0 %v2642_v24 }
  0xa3   : > { %590 = vmatprep.subr.bf16.mxu0 %v2280_v3  ;;  %v2284_v6 = vld [vmem:[#allocation5 + $0x1c] ss:$12 sps:$4 sm:$0xff]   ;;  %v2286_v7 = vld [vmem:[#allocation5 + $0x18] ss:$12 sps:$4 sm:$0xff]   ;;  %2092 = vmatpush3.bf16.msra.mxu1 %v2283_v5  ;;  %v2287_v8 = vld [vmem:[#allocation5 + $0x20] ss:$12 sps:$4 sm:$0xff]  }
  0xa4   : > { %415 = vadd.xlane.f32.xlu0 %v414_v2  ;;  %591 = vmatpush1.bf16.msra.mxu0 %v2282_v4  ;;  %v2288_v9 = vld [vmem:[#allocation5 + $0x34] ss:$12 sps:$4 sm:$0xff]   ;;  %v2290_v10 = vld [vmem:[#allocation5 + $0x30] ss:$12 sps:$4 sm:$0xff]   ;;  %v2291_v11 = vld [vmem:[#allocation5 + $0x38] ss:$12 sps:$4 sm:$0xff]  }
  0xa5   : > { %592 = vmatprep.subr.bf16.mxu0 %v2284_v6  ;;  %2093 = vmatprep.subr.bf16.mxu1 %v2641_v0  ;;  %v2292_v12 = vld [vmem:[#allocation5 + $0x4c] ss:$12 sps:$4 sm:$0xff]   ;;  %v2294_v13 = vld [vmem:[#allocation5 + $0x48] ss:$12 sps:$4 sm:$0xff]   ;;  %v2295_v14 = vld [vmem:[#allocation5 + $0x50] ss:$12 sps:$4 sm:$0xff]  }
  0xa6   : > { %v2296_v15 = vld [vmem:[#allocation5 + $0x64] ss:$12 sps:$4 sm:$0xff]   ;;  %v2298_v16 = vld [vmem:[#allocation5 + $0x60] ss:$12 sps:$4 sm:$0xff]   ;;  %v2299_v17 = vld [vmem:[#allocation5 + $0x68] ss:$12 sps:$4 sm:$0xff]   ;;  %2107 = vmatprep.mubr.msk.bf16.mxu1 %vm2643_vm0, %v2641_v0 }
  0xa7   : > { %2094 = vmatpush3.bf16.msra.mxu1 %v2287_v8  ;;  %v2300_v18 = vld [vmem:[#allocation5 + $0x7c] ss:$12 sps:$4 sm:$0xff]   ;;  %v2302_v19 = vld [vmem:[#allocation5 + $0x78] ss:$12 sps:$4 sm:$0xff]   ;;  %v2303_v20 = vld [vmem:[#allocation5 + $0x80] ss:$12 sps:$4 sm:$0xff]  }
  0xa8   : > { %593 = vmatpush1.bf16.msra.mxu0 %v2286_v7  ;;  %2095 = vmatprep.subr.bf16.mxu1 %v2641_v0  ;;  %v2304_v21 = vld [vmem:[#allocation5 + $0x94] ss:$12 sps:$4 sm:$0xff]   ;;  %v2306_v22 = vld [vmem:[#allocation5 + $0x90] ss:$12 sps:$4 sm:$0xff]   ;;  %v2307_v23 = vld [vmem:[#allocation5 + $0x98] ss:$12 sps:$4 sm:$0xff]  }
  0xa9   : > { %594 = vmatprep.subr.bf16.mxu0 %v2288_v9  ;;  %v2308_v25 = vld [vmem:[#allocation5 + $0xac] ss:$12 sps:$4 sm:$0xff]   ;;  %v2310_v26 = vld [vmem:[#allocation5 + $0xa8] ss:$12 sps:$4 sm:$0xff]   ;;  %v2311_v27 = vld [vmem:[#allocation5 + $0xb0] ss:$12 sps:$4 sm:$0xff]  }
  0xaa   : > { %v1941_v32 = vld [vmem:[%s3112_s1] ss:$0 sm:$0xff]  ;;  %s2644_s9 = smov 1   ;;  %s2645_s27 = smov 127   ;;  %v2956_v45 = vand.u32 127, %v671_v44  ;;  %vm706_vm2 = vcmask 261120  }
  0xab   : > { %2096 = vmatpush3.bf16.msra.mxu1 %v2291_v11  ;;  %v410_v47 = vld [vmem:[%s3118_s7] sm:$0xf]  ;;  %s2646_s29 = smov 96   ;;  %s2647_s13 = smov 64   ;;  %vm1015_vm3 = vcmask 1043456   ;;  %vm966_vm5 = vcmask 64512  }
  0xac   : > { %595 = vmatpush1.bf16.msra.mxu0 %v2290_v10  ;;  %2097 = vmatprep.subr.bf16.mxu1 %v2641_v0  ;;  %v677_v46 = vand.u32 1, %v2956_v45  ;;  %v412_v48 = vld [vmem:[%s3119_s8] sm:$0xf]  ;;  %v411_v49 = vunpack.c.l.bf16 %v410_v47  ;;  %s2648_s26 = smov 32   ;;  %vm1220_vm9 = vcmask 523264   ;;  %vm1222_vm10 = vcmask 785408  }
  0xad   : > { %596 = vmatprep.subr.bf16.mxu0 %v2292_v12  ;;  %v413_v50 = vunpack.c.l.bf16 %v412_v48  ;;  %s2032_s18 = sshll.u32 %s2721_s15, 7  ;;  %s3144_s17 = sld [smem:[#allocation17_spill]] }
  0xae   : > { %vm2965_vm1 = vcmp.eq.s32.totalorder %v677_v46, 0  ;;  %s1804_s15 = scalar_lea.sflag [#allocation4], %s2912_s3  ;;  %p3145_p0 = scmp.ne.s32.totalorder %s3134_s23, 0 }
  0xaf   : > { %2098 = vmatpush3.bf16.msra.mxu1 %v2295_v14 }
  0xb0   : > { %597 = vmatpush1.bf16.msra.mxu0 %v2294_v13  ;;  %2099 = vmatprep.subr.bf16.mxu1 %v2641_v0 }
  0xb1   : > { %598 = vmatprep.subr.bf16.mxu0 %v2296_v15 }
  0xb3   : > { %2100 = vmatpush3.bf16.msra.mxu1 %v2299_v17  ;;  %v906_v17 = vshrl.u32 %v671_v44, 7  ;;  %s3067_s20 = scalar_lea.hbm %s3144_s17, %s2032_s18 }
  0xb4   : > { %599 = vmatpush1.bf16.msra.mxu0 %v2298_v16  ;;  %2101 = vmatprep.subr.bf16.mxu1 %v2641_v0 }
  0xb5   : > { %600 = vmatprep.subr.bf16.mxu0 %v2300_v18  ;;  %v914_v18 = vand.u32 7, %v906_v17 }
  0xb7   : > { %2102 = vmatpush3.bf16.msra.mxu1 %v2303_v20  ;;  %vm958_vm4 = vcmp.ge.s32.totalorder %v914_v18, %v2956_v45 }
  0xb8   : > { %601 = vmatpush1.bf16.msra.mxu0 %v2302_v19  ;;  %2103 = vmatprep.subr.bf16.mxu1 %v2641_v0 }
  0xb9   : > { %602 = vmatprep.subr.bf16.mxu0 %v2304_v21 }
  0xbb   : > { %2104 = vmatpush3.bf16.msra.mxu1 %v2307_v23 }
  0xbc   : > { %603 = vmatpush1.bf16.msra.mxu0 %v2306_v22  ;;  %2105 = vmatprep.subr.bf16.mxu1 %v2641_v0 }
  0xbd   : > { %604 = vmatprep.subr.bf16.mxu0 %v2308_v25 }
  0xbf   : > { %2106 = vmatpush3.bf16.msra.mxu1 %v2311_v27  ;;  %v908_v27 = vadd.s32 16, %v906_v17 }
  0xc0   : > { %605 = vmatpush1.bf16.msra.mxu0 %v2310_v26  ;;  %2117 = vmatprep.subr.bf16.mxu1 %v2641_v0  ;;  %v907_v26 = vadd.s32 8, %v906_v17 }
  0xc1   : > { %2111 = vmatprep.subr.bf16.mxu0 %v2641_v0 }
 0x131   : > { %v416_v28 = vpop.xlane.xlu0 %415 }
 0x132   : > { %v418_v29 = vmul.f32 0.0078125, %v416_v28  ;;  %v921_v28 = vand.u32 7, %v907_v26 }
 0x134   : > { %v419_v30 = vadd.f32 1e-05, %v418_v29  ;;  %v928_v29 = vand.u32 7, %v908_v27  ;;  %vm959_vm6 = vcmp.ge.s32.totalorder %v921_v28, %v2956_v45 }
 0x136   : > { %2384 = vrsqrt.f32 %v419_v30  ;;  %vm960_vm7 = vcmp.ge.s32.totalorder %v928_v29, %v2956_v45 }
 0x140   : > { %v2385_v31 = vpop.eup %2384 }
 0x141   : > { %v421_v33 = vmul.f32 %v2385_v31, %v2931_v1 }
 0x143   : > { %v428_v34 = vmul.f32 %v1941_v32, %v421_v33 }
 0x145   : > { %v429_v35 = vpack.c.bf16 %v428_v34, %v428_v34 }
 0x147   : > { %623 = vmatmul.mubr.bf16.vlgmr.msra.gmra.mrb[0].mxu0 %v429_v35  ;;  %2108 = vmatmul.mubr.bf16.vlgmr.msra.gmra.mrb[0].mxu1 %v429_v35 }
 0x148   : > { %2113 = vmatprep.mubr.msk.bf16.mxu0 %vm2643_vm0, %v2641_v0  ;;  %2119 = vmatprep.mubr.msk.bf16.mxu1 %vm2643_vm0, %v2641_v0 }
 0x21a   : > { %v624_v36 = vpop.f32.mrb[0].mxu0  ;;  %v665_v37 = vpop.f32.mrb[0].mxu1 }
 0x21b   : > { %v626_v38 = vpop.f32.mrb[1].mxu0  ;;  %v2109_v39 = vpop.f32.mrb[1].mxu1  ;;  %v690_v63 = vmul.f32 %v624_v36, %v411_v49  ;;  %v2988_v10 = vpack.c.bf16 %v665_v37, %v665_v37 }
 0x21c   : > { %v668_v40 = vpop.f32.mrb[2].mxu1  ;;  %698 = vrot.lane.b32.xlu1 %v626_v38, %s2644_s9  ;;  %696 = vrot.lane.b32.xlu0 %v626_v38, %s2645_s27  ;;  %v628_v41 = vpop.f32.mrb[2].mxu0  ;;  %v700_v55 = vmul.f32 %v626_v38, %v411_v49 }
 0x21d   : > { %v629_v42 = vpop.f32.mrb[3].mxu0  ;;  %v2110_v43 = vpop.f32.mrb[3].mxu1  ;;  %v1017_v13 = vsel %vm1015_vm3, %v2988_v10, 0 }
 0x220   : > { %686 = vrot.lane.b32.xlu1 %v624_v36, %s2645_s27 }
 0x224   : > { %688 = vrot.lane.b32.xlu1 %v624_v36, %s2644_s9  ;;  %v909_v36 = vadd.s32 24, %v906_v17  ;;  %s405_s9 = scalar_lea.vmem [#allocation11], %s1935_s14  ;;  %s2649_s14 = smov [#allocation11]  }
 0x225   : > { %s1817_s27 = sshll.u32 %s405_s9, 4  ;;  %s3069_s27 = int_to_ptr.vmem [resolvable:$true] %s1817_s27 }
 0x226   : > { %v935_v43 = vand.u32 7, %v909_v36 }
 0x228   : > { %vm961_vm8 = vcmp.ge.s32.totalorder %v935_v43, %v2956_v45 }
 0x28e   : > { %v699_v52 = vpop.permute.xlu1 %698  ;;  %v697_v53 = vpop.permute.xlu0 %696 }
 0x28f   : > { %v701_v54 = vsel %vm2965_vm1, %v697_v53, %v699_v52 }
 0x290   : > { %v702_v56 = vmul.f32 %v701_v54, %v413_v50 }
 0x292   : > { %v703_v57 = vadd.f32 %v702_v56, %v700_v55  ;;  %v687_v58 = vpop.permute.xlu1 %686 }
 0x294   : > { %v704_v59 = vpack.c.bf16 %v703_v57, %v703_v57 }
 0x296   : > { %v689_v60 = vpop.permute.xlu1 %688  ;;  %757 = vrot.lane.b32.xlu1 %v704_v59, %s2646_s29  ;;  %v711_v61 = vsel %vm706_vm2, %v704_v59, 0 }
 0x297   : > { %v691_v62 = vsel %vm2965_vm1, %v687_v58, %v689_v60  ;;  %2112 = vmatpush3.bf16.xpose.msra.mxu0 %v711_v61 }
 0x298   : > { %v692_v2 = vmul.f32 %v691_v62, %v413_v50  ;;  %2123 = vmatprep.subr.bf16.mxu0 %v2641_v0 }
 0x29a   : > { %v693_v3 = vadd.f32 %v692_v2, %v690_v63  ;;  %807 = vrot.lane.b32.xlu1 %v704_v59, %s2647_s13 }
 0x29c   : > { %v694_v4 = vmul.f32 0.17677669, %v693_v3 }
 0x29e   : > { %v695_v5 = vpack.c.bf16 %v694_v4, %v694_v4 }
 0x2a0   : > { %805 = vrot.lane.b32.xlu0 %v695_v5, %s2647_s13  ;;  %754 = vrot.lane.b32.xlu1 %v695_v5, %s2646_s29 }
 0x2a1   : > { %2114 = vmatmul.mubr.msk.bf16.vlgmr.msra.gmra.mrb[4].mxu0 %vm706_vm2, %v695_v5 }
 0x2a2   : > { %2125 = vmatprep.mubr.msk.bf16.mxu0 %vm2643_vm0, %v2641_v0 }
 0x2a4   : > { %857 = vrot.lane.b32.xlu1 %v704_v59, %s2648_s26 }
 0x2a8   : > { %855 = vrot.lane.b32.xlu1 %v695_v5, %s2648_s26 }
 0x308   : > { %v758_v6 = vpop.permute.xlu1 %757 }
 0x309   : > { %v763_v7 = vsel %vm706_vm2, %v758_v6, 0 }
 0x30a   : > { %2118 = vmatpush3.bf16.xpose.msra.mxu1 %v763_v7 }
 0x30b   : > { %2129 = vmatprep.subr.bf16.mxu1 %v2641_v0 }
 0x30c   : > { %v808_v8 = vpop.permute.xlu1 %807 }
 0x30d   : > { %v813_v9 = vsel %vm706_vm2, %v808_v8, 0 }
 0x30e   : > { %2124 = vmatpush3.bf16.xpose.msra.mxu0 %v813_v9 }
 0x30f   : > { %2135 = vmatprep.subr.bf16.mxu0 %v2641_v0 }
 0x312   : > { %v755_v11 = vpop.permute.xlu1 %754  ;;  %v806_v12 = vpop.permute.xlu0 %805 }
 0x313   : > { %2120 = vmatmul.mubr.msk.bf16.vlgmr.msra.gmra.mrb[4].mxu1 %vm706_vm2, %v755_v11 }
 0x314   : > { %2131 = vmatprep.mubr.msk.bf16.mxu1 %vm2643_vm0, %v2641_v0 }
 0x315   : > { %2126 = vmatmul.mubr.msk.bf16.vlgmr.msra.gmra.mrb[8].mxu0 %vm706_vm2, %v806_v12 }
 0x316   : > { %v858_v14 = vpop.permute.xlu1 %857  ;;  %2136 = vmatpush3.bf16.msra.mxu0 %v1017_v13  ;;  %2137 = vmatprep.mubr.msk.bf16.mxu0 %vm2643_vm0, %v2641_v0 }
 0x317   : > { %v863_v15 = vsel %vm706_vm2, %v858_v14, 0  ;;  %2147 = vmatprep.subr.bf16.mxu0 %v2641_v0 }
 0x318   : > { %2130 = vmatpush3.bf16.xpose.msra.mxu1 %v863_v15 }
 0x319   : > { %2141 = vmatprep.subr.bf16.mxu1 %v2641_v0 }
 0x31a   : > { %v856_v16 = vpop.permute.xlu1 %855 }
 0x31f   : > { %2132 = vmatmul.mubr.msk.bf16.vlgmr.msra.gmra.mrb[8].mxu1 %vm706_vm2, %v856_v16 }
 0x320   : > { %2143 = vmatprep.mubr.msk.bf16.mxu1 %vm2643_vm0, %v2641_v0 }
 0x374   : > { %v747_v19 = vpop.f32.mrb[4].mxu0 }
 0x375   : > { %v962_v20 = vsel %vm958_vm4, %v747_v19, -1e+30  ;;  %v2115_v21 = vpop.f32.mrb[5].mxu0 }
 0x376   : > { %v750_v22 = vpop.f32.mrb[6].mxu0  ;;  %v967_v23 = vsel %vm966_vm5, %v962_v20, -inf }
 0x377   : > { %968 = vmax.xlane.f32.xlu0 %v967_v23  ;;  %v2116_v25 = vpop.f32.mrb[7].mxu0 }
 0x3e6   : > { %v799_v30 = vpop.f32.mrb[4].mxu1 }
 0x3e7   : > { %v963_v31 = vsel %vm959_vm6, %v799_v30, -1e+30  ;;  %v2121_v32 = vpop.f32.mrb[5].mxu1 }
 0x3e8   : > { %v802_v33 = vpop.f32.mrb[6].mxu1  ;;  %v849_v34 = vpop.f32.mrb[8].mxu0  ;;  %v970_v35 = vsel %vm966_vm5, %v963_v31, -inf  ;;  %v2313_v32 = vld [vmem:[#allocation7 + $0x8] sm:$0xff]  }
 0x3e9   : > { %v964_v37 = vsel %vm960_vm7, %v849_v34, -1e+30  ;;  %971 = vmax.xlane.f32.xlu1 %v970_v35  ;;  %v2122_v38 = vpop.f32.mrb[7].mxu1  ;;  %v2127_v39 = vpop.f32.mrb[9].mxu0  ;;  %v2314_v33 = vld [vmem:[#allocation7 + $0x10] sm:$0xff]  }
 0x3ea   : > { %v852_v40 = vpop.f32.mrb[10].mxu0  ;;  %v973_v41 = vsel %vm966_vm5, %v964_v37, -inf  ;;  %v2316_v39 = vld [vmem:[#allocation7 + $0x20] sm:$0xff]  }
 0x3eb   : > { %974 = vmax.xlane.f32.xlu0 %v973_v41  ;;  %v2128_v42 = vpop.f32.mrb[11].mxu0  ;;  %v2317_v40 = vld [vmem:[#allocation7 + $0x28] sm:$0xff]   ;;  %v2318_v41 = vld [vmem:[#allocation7 + $0x30] sm:$0xff]  }
 0x3ec   : > { %v2319_v42 = vld [vmem:[#allocation7 + $0x38] sm:$0xff]  }
 0x3f2   : > { %v899_v44 = vpop.f32.mrb[8].mxu1 }
 0x3f3   : > { %v965_v46 = vsel %vm961_vm8, %v899_v44, -1e+30  ;;  %v2133_v47 = vpop.f32.mrb[9].mxu1 }
 0x3f4   : > { %v902_v48 = vpop.f32.mrb[10].mxu1  ;;  %v976_v49 = vsel %vm966_vm5, %v965_v46, -inf }
 0x3f5   : > { %v2134_v50 = vpop.f32.mrb[11].mxu1  ;;  %977 = vmax.xlane.f32.xlu0 %v976_v49 }
 0x3fa   : > { %1061 = vrot.lane.b32.xlu1 %v2988_v10, %s2646_s29 }
 0x404   : > { %v969_v51 = vpop.xlane.xlu0 %968 }
 0x405   : > { %v979_v52 = vsub.f32 %v962_v20, %v969_v51 }
 0x407   : > { %v983_v53 = vmul.f32 1.442695, %v979_v52 }
 0x409   : > { %2386 = vpow2.f32 %v983_v53 }
 0x413   : > { %v2387_v54 = vpop.eup %2386 }
 0x414   : > { %v991_v55 = vsel %vm966_vm5, %v2387_v54, 0.0 }
 0x41e   : > { %992 = vadd.xlane.f32.xlu1 %v991_v55 }
 0x476   : > { %v972_v45 = vpop.xlane.xlu1 %971 }
 0x477   : > { %v980_v56 = vsub.f32 %v963_v31, %v972_v45  ;;  %v2312_v31 = vld [vmem:[#allocation7] sm:$0xff]  }
 0x478   : > { %v975_v57 = vpop.xlane.xlu0 %974 }
 0x479   : > { %v985_v58 = vmul.f32 1.442695, %v980_v56  ;;  %v981_v59 = vsub.f32 %v964_v37, %v975_v57  ;;  %v2315_v37 = vld [vmem:[#allocation7 + $0x18] sm:$0xff]  }
 0x47a   : > { %v1062_v60 = vpop.permute.xlu1 %1061 }
 0x47b   : > { %2388 = vpow2.f32 %v985_v58  ;;  %v987_v61 = vmul.f32 1.442695, %v981_v59  ;;  %v1067_v62 = vsel %vm1015_vm3, %v1062_v60, 0 }
 0x47c   : > { %2142 = vmatpush3.bf16.msra.mxu1 %v1067_v62  ;;  %v2322_v62 = vld [vmem:[#allocation8 + $0x4] ss:$16 sps:$4 sm:$0xff]  }
 0x47d   : > { %2390 = vpow2.f32 %v987_v61  ;;  %2153 = vmatprep.subr.bf16.mxu1 %v2641_v0  ;;  %v2320_v61 = vld [vmem:[#allocation8] ss:$16 sps:$4 sm:$0xff]  }
 0x482   : > { %v978_v63 = vpop.xlane.xlu0 %977 }
 0x483   : > { %v982_v2 = vsub.f32 %v965_v46, %v978_v63  ;;  %v2323_v63 = vld [vmem:[#allocation8 + $0x8] ss:$16 sps:$4 sm:$0xff]  }
 0x485   : > { %v2389_v3 = vpop.eup %2388  ;;  %v989_v4 = vmul.f32 1.442695, %v982_v2  ;;  %v2325_v2 = vld [vmem:[#allocation8 + $0xc] ss:$16 sps:$4 sm:$0xff]  }
 0x486   : > { %v994_v5 = vsel %vm966_vm5, %v2389_v3, 0.0 }
 0x487   : > { %v2391_v6 = vpop.eup %2390  ;;  %2392 = vpow2.f32 %v989_v4  ;;  %995 = vadd.xlane.f32.xlu0 %v994_v5  ;;  %v2331_v4 = vld [vmem:[#allocation8 + $0x2c] ss:$16 sps:$4 sm:$0xff]   ;;  %v2326_v5 = vld [vmem:[#allocation8 + $0x20] ss:$16 sps:$4 sm:$0xff]  }
 0x488   : > { %v997_v7 = vsel %vm966_vm5, %v2391_v6, 0.0 }
 0x489   : > { %998 = vadd.xlane.f32.xlu1 %v997_v7  ;;  %v2334_v7 = vld [vmem:[#allocation8 + $0x44] ss:$16 sps:$4 sm:$0xff]  }
 0x491   : > { %v2393_v8 = vpop.eup %2392 }
 0x492   : > { %v1000_v9 = vsel %vm966_vm5, %v2393_v8, 0.0 }
 0x493   : > { %1001 = vadd.xlane.f32.xlu0 %v1000_v9  ;;  %v2332_v9 = vld [vmem:[#allocation8 + $0x40] ss:$16 sps:$4 sm:$0xff]  }
 0x49a   : > { %1159 = vrot.lane.b32.xlu1 %v2988_v10, %s2648_s26 }
 0x4a9   : > { %1110 = vrot.lane.b32.xlu0 %v2988_v10, %s2647_s13 }
 0x4ab   : > { %v993_v11 = vpop.xlane.xlu1 %992 }
 0x4ac   : > { %2394 = vrcp.f32 %v993_v11 }
 0x4b6   : > { %v2395_v12 = vpop.eup %2394 }
 0x4b7   : > { %v1007_v13 = vmul.f32 %v2395_v12, %v2387_v54 }
 0x4b9   : > { %v1011_v14 = vpack.c.bf16 %v1007_v13, %v1007_v13 }
 0x4bb   : > { %2138 = vmatmul.mubr.msk.bf16.vlgmr.msra.gmra.mrb[12].mxu0 %vm966_vm5, %v1011_v14 }
 0x4bc   : > { %2149 = vmatprep.mubr.msk.bf16.mxu0 %vm2643_vm0, %v2641_v0 }
 0x514   : > { %v996_v15 = vpop.xlane.xlu0 %995 }
 0x515   : > { %2396 = vrcp.f32 %v996_v15 }
 0x516   : > { %v999_v16 = vpop.xlane.xlu1 %998 }
 0x517   : > { %2398 = vrcp.f32 %v999_v16 }
 0x51a   : > { %v1160_v21 = vpop.permute.xlu1 %1159 }
 0x51b   : > { %v1165_v23 = vsel %vm1015_vm3, %v1160_v21, 0  ;;  %v2344_v21 = vld [vmem:[#allocation8 + $0x80] ss:$16 sps:$4 sm:$0xff]  }
 0x51f   : > { %v2397_v17 = vpop.eup %2396 }
 0x520   : > { %v1008_v18 = vmul.f32 %v2397_v17, %v2389_v3  ;;  %v1002_v19 = vpop.xlane.xlu0 %1001  ;;  %v2328_v3 = vld [vmem:[#allocation8 + $0x24] ss:$16 sps:$4 sm:$0xff]  }
 0x521   : > { %v2399_v20 = vpop.eup %2398  ;;  %2400 = vrcp.f32 %v1002_v19  ;;  %v2340_v17 = vld [vmem:[#allocation8 + $0x64] ss:$16 sps:$4 sm:$0xff]   ;;  %v2338_v19 = vld [vmem:[#allocation8 + $0x60] ss:$16 sps:$4 sm:$0xff]  }
 0x522   : > { %v1059_v10 = vpack.c.bf16 %v1008_v18, %v1008_v18  ;;  %v1009_v22 = vmul.f32 %v2399_v20, %v2391_v6  ;;  %v2329_v6 = vld [vmem:[#allocation8 + $0x28] ss:$16 sps:$4 sm:$0xff]   ;;  %v2343_v18 = vld [vmem:[#allocation8 + $0x6c] ss:$16 sps:$4 sm:$0xff]  }
 0x523   : > { %v2341_v20 = vld [vmem:[#allocation8 + $0x68] ss:$16 sps:$4 sm:$0xff]  }
 0x524   : > { %2144 = vmatmul.mubr.msk.bf16.vlgmr.msra.gmra.mrb[12].mxu1 %vm966_vm5, %v1059_v10  ;;  %v1111_v25 = vpop.permute.xlu0 %1110  ;;  %v1109_v27 = vpack.c.bf16 %v1009_v22, %v1009_v22  ;;  %v2346_v10 = vld [vmem:[#allocation8 + $0x84] ss:$16 sps:$4 sm:$0xff]   ;;  %v2347_v22 = vld [vmem:[#allocation8 + $0x88] ss:$16 sps:$4 sm:$0xff]  }
 0x525   : > { %2154 = vmatpush3.bf16.msra.mxu1 %v1165_v23  ;;  %v1116_v26 = vsel %vm1015_vm3, %v1111_v25, 0  ;;  %2155 = vmatprep.mubr.msk.bf16.mxu1 %vm2643_vm0, %v2641_v0  ;;  %v2352_v23 = vld [vmem:[#allocation8 + $0xa4] ss:$16 sps:$4 sm:$0xff]   ;;  %v2355_v25 = vld [vmem:[#allocation8 + $0xac] ss:$16 sps:$4 sm:$0xff]  }
 0x526   : > { %2148 = vmatpush3.bf16.msra.mxu0 %v1116_v26  ;;  %1536 = vmatprep.subr.bf16.mxu1 %v2322_v62  ;;  %v2350_v26 = vld [vmem:[#allocation8 + $0xa0] ss:$16 sps:$4 sm:$0xff]  }
 0x527   : > { %2159 = vmatprep.subr.bf16.mxu0 %v2641_v0 }
 0x529   : > { %2150 = vmatmul.mubr.msk.bf16.vlgmr.msra.gmra.mrb[16].mxu0 %vm966_vm5, %v1109_v27  ;;  %v2353_v27 = vld [vmem:[#allocation8 + $0xa8] ss:$16 sps:$4 sm:$0xff]  }
 0x52a   : > { %2175 = vmatprep.mubr.msk.bf16.mxu0 %vm2643_vm0, %v2641_v0  ;;  %2160 = vmatpush3.bf16.msra.mxu0 %v2312_v31  ;;  %v2359_v31 = vld [vmem:[#allocation8 + $0xc8] ss:$16 sps:$4 sm:$0xff]  }
 0x52b   : > { %v2401_v28 = vpop.eup %2400  ;;  %2161 = vmatprep.subr.bf16.mxu0 %v2641_v0 }
 0x52c   : > { %v1010_v29 = vmul.f32 %v2401_v28, %v2393_v8  ;;  %v2337_v8 = vld [vmem:[#allocation8 + $0x4c] ss:$16 sps:$4 sm:$0xff]   ;;  %v2358_v28 = vld [vmem:[#allocation8 + $0xc4] ss:$16 sps:$4 sm:$0xff]  }
 0x52e   : > { %v1158_v30 = vpack.c.bf16 %v1010_v29, %v1010_v29  ;;  %2162 = vmatpush3.bf16.msra.mxu0 %v2313_v32  ;;  %v2361_v29 = vld [vmem:[#allocation8 + $0xcc] ss:$16 sps:$4 sm:$0xff]   ;;  %v2364_v32 = vld [vmem:[#allocation8 + $0xe4] ss:$16 sps:$4 sm:$0xff]  }
 0x52f   : > { %2163 = vmatprep.subr.bf16.mxu0 %v2641_v0 }
 0x530   : > { %2156 = vmatmul.mubr.msk.bf16.vlgmr.msra.gmra.mrb[16].mxu1 %vm966_vm5, %v1158_v30  ;;  %v2356_v30 = vld [vmem:[#allocation8 + $0xc0] ss:$16 sps:$4 sm:$0xff]  }
 0x531   : > { %1568 = vmatprep.mubr.bf16.mxu1 %v2642_v24  ;;  %1537 = vmatpush1.bf16.msra.mxu1 %v2320_v61 }
 0x532   : > { %2164 = vmatpush3.bf16.msra.mxu0 %v2314_v33  ;;  %1538 = vmatprep.subr.bf16.mxu1 %v2328_v3  ;;  %v2367_v33 = vld [vmem:[#allocation8 + $0xec] ss:$16 sps:$4 sm:$0xff]  }
 0x533   : > { %2165 = vmatprep.subr.bf16.mxu0 %v2641_v0 }
 0x535   : > { %1539 = vmatpush1.bf16.msra.mxu1 %v2326_v5 }
 0x536   : > { %2166 = vmatpush3.bf16.msra.mxu0 %v2315_v37  ;;  %1540 = vmatprep.subr.bf16.mxu1 %v2334_v7 }
 0x537   : > { %2167 = vmatprep.subr.bf16.mxu0 %v2641_v0 }
 0x539   : > { %1541 = vmatpush1.bf16.msra.mxu1 %v2332_v9 }
 0x53a   : > { %2168 = vmatpush3.bf16.msra.mxu0 %v2316_v39  ;;  %1542 = vmatprep.subr.bf16.mxu1 %v2340_v17 }
 0x53b   : > { %2169 = vmatprep.subr.bf16.mxu0 %v2641_v0 }
 0x53d   : > { %1543 = vmatpush1.bf16.msra.mxu1 %v2338_v19 }
 0x53e   : > { %2170 = vmatpush3.bf16.msra.mxu0 %v2317_v40  ;;  %1544 = vmatprep.subr.bf16.mxu1 %v2346_v10  ;;  %v1982_v40 = vld [vmem:[%s3113_s2] ss:$0 sm:$0xff] }
 0x53f   : > { %2171 = vmatprep.subr.bf16.mxu0 %v2641_v0 }
 0x541   : > { %1545 = vmatpush1.bf16.msra.mxu1 %v2344_v21 }
 0x542   : > { %2172 = vmatpush3.bf16.msra.mxu0 %v2318_v41  ;;  %1546 = vmatprep.subr.bf16.mxu1 %v2352_v23 }
 0x543   : > { %2173 = vmatprep.subr.bf16.mxu0 %v2641_v0 }
 0x545   : > { %1547 = vmatpush1.bf16.msra.mxu1 %v2350_v26 }
 0x546   : > { %2174 = vmatpush3.bf16.msra.mxu0 %v2319_v42  ;;  %1548 = vmatprep.subr.bf16.mxu1 %v2358_v28 }
 0x547   : > { %1577 = vmatprep.subr.bf16.mxu0 %v2325_v2 }
 0x549   : > { %1549 = vmatpush1.bf16.msra.mxu1 %v2356_v30 }
 0x54a   : > { %1550 = vmatprep.subr.bf16.mxu1 %v2364_v32 }
 0x58e   : > { %v1053_v34 = vpop.f32.mrb[12].mxu0 }
 0x58f   : > { %v2139_v35 = vpop.f32.mrb[13].mxu0 }
 0x590   : > { %v1056_v36 = vpop.f32.mrb[14].mxu0  ;;  %v2365_v35 = vld [vmem:[#allocation8 + $0xe8] ss:$16 sps:$4 sm:$0xff]  }
 0x591   : > { %v2140_v38 = vpop.f32.mrb[15].mxu0 }
 0x5f7   : > { %v1103_v43 = vpop.f32.mrb[12].mxu1 }
 0x5f8   : > { %1208 = vrot.lane.b32.xlu1 %v1103_v43, %s2648_s26  ;;  %v2145_v44 = vpop.f32.mrb[13].mxu1 }
 0x5f9   : > { %v1106_v46 = vpop.f32.mrb[14].mxu1  ;;  %v2368_v44 = vld [vmem:[#allocation10 + $0x40] sm:$0xff]  }
 0x5fa   : > { %v2146_v47 = vpop.f32.mrb[15].mxu1  ;;  %v2369_v46 = vld [vmem:[#allocation10] sm:$0xff]  }
 0x5fb   : > { %v2370_v47 = vld [vmem:[#allocation10 + $0x48] sm:$0xff]  }
 0x5fc   : > { %v1152_v48 = vpop.f32.mrb[16].mxu0 }
 0x5fd   : > { %1212 = vrot.lane.b32.xlu0 %v1152_v48, %s2647_s13  ;;  %v2151_v49 = vpop.f32.mrb[17].mxu0  ;;  %v2371_v48 = vld [vmem:[#allocation10 + $0x8] sm:$0xff]   ;;  %s2558_s13 = sshll.u32 %s2649_s14, 4  ;;  %s2559_s13 = int_to_ptr.vmem [resolvable:$false] %s2558_s13 }
 0x5fe   : > { %v1155_v50 = vpop.f32.mrb[18].mxu0  ;;  %v2372_v49 = vld [vmem:[#allocation10 + $0x50] sm:$0xff]   ;;  %s2560_s26 = scalar_lea.vmem %s2559_s13, 256  ;;  %p2561_p10 = scmp.lt.s32.totalorder %s3069_s27, %s2559_s13 }
 0x5ff   : > { %v2152_v51 = vpop.f32.mrb[19].mxu0  ;;  %v2373_v50 = vld [vmem:[#allocation10 + $0x10] sm:$0xff]  }
 0x600   : > { %v2374_v51 = vld [vmem:[#allocation10 + $0x58] sm:$0xff]  }
 0x603   : > { %v1201_v52 = vpop.f32.mrb[16].mxu1 }
 0x604   : > { %1216 = vrot.lane.b32.xlu1 %v1201_v52, %s2646_s29  ;;  %v2157_v53 = vpop.f32.mrb[17].mxu1  ;;  %v2375_v52 = vld [vmem:[#allocation10 + $0x18] sm:$0xff]   ;;  %s2554_s29 = scalar_lea.vmem %s3069_s27, 128 }
 0x605   : > { %v1204_v54 = vpop.f32.mrb[18].mxu1  ;;  %v2376_v53 = vld [vmem:[#allocation10 + $0x60] sm:$0xff]   ;;  %p2555_p6 = scmp.ne.s32.totalorder %s3069_s27, %s2554_s29  ;;  %p2562_p1 = scmp.lt.s32.totalorder %s2560_s26, %s2554_s29 }
 0x606   : > { %v2158_v0 = vpop.f32.mrb[19].mxu1  ;;  %v2377_v54 = vld [vmem:[#allocation10 + $0x20] sm:$0xff]  }
 0x607   : > { %v2378_v0 = vld [vmem:[#allocation10 + $0x68] sm:$0xff]   ;;  %p2556_p2 = pnand %p2555_p6, %p3145_p0  ;;  %p2563_p11 = por %p2562_p1, %p2561_p10 }
 0x609   : > { %p2557_p5 = pneg %p2556_p2 }
 0x60b   : > { %p2564_p12 = pnand %p2563_p11, %p2557_p5 }
 0x66a   : > { %v1209_v55 = vpop.permute.xlu1 %1208 }
 0x66b   : > { %v1219_v56 = vsel %vm706_vm2, %v1053_v34, %v1209_v55  ;;  %v2362_v34 = vld [vmem:[#allocation8 + $0xe0] ss:$16 sps:$4 sm:$0xff]   ;;  %v2379_v55 = vld [vmem:[#allocation10 + $0x28] sm:$0xff]  }
 0x66c   : > { %1551 = vmatpush1.bf16.msra.mxu1 %v2362_v34 }
 0x66d   : > { %2069 = vmatprep.subr.bf16.mxu1 %v2368_v44 }
 0x66f   : > { %v1213_v45 = vpop.permute.xlu0 %1212 }
 0x670   : > { %v1221_v57 = vsel %vm1220_vm9, %v1219_v56, %v1213_v45  ;;  %v2380_v45 = vld [vmem:[#allocation10 + $0x70] sm:$0xff]  }
 0x671   : > { %v2381_v56 = vld [vmem:[#allocation10 + $0x30] sm:$0xff]  }
 0x676   : > { %v1217_v58 = vpop.permute.xlu1 %1216 }
 0x677   : > { %v1223_v59 = vsel %vm1222_vm10, %v1221_v57, %v1217_v58  ;;  %v2382_v57 = vld [vmem:[#allocation10 + $0x78] sm:$0xff]  }
 0x678   : > { %v1224_v60 = vpack.c.bf16 %v1223_v59, %v1223_v59  ;;  %v2383_v58 = vld [vmem:[#allocation10 + $0x38] sm:$0xff]  }
 0x67a   : > { %2176 = vmatmul.mubr.bf16.vlgmr.msra.gmra.mrb[20].mxu0 %v1224_v60 }
 0x67b   : > { %1609 = vmatprep.mubr.bf16.mxu0 %v2642_v24  ;;  %1578 = vmatpush1.bf16.msra.mxu0 %v2323_v63  ;;  %v2335_v24 = vld [vmem:[#allocation8 + $0x48] ss:$16 sps:$4 sm:$0xff]  }
 0x67c   : > { %1579 = vmatprep.subr.bf16.mxu0 %v2331_v4 }
 0x67f   : > { %1580 = vmatpush1.bf16.msra.mxu0 %v2329_v6 }
 0x680   : > { %1581 = vmatprep.subr.bf16.mxu0 %v2337_v8 }
 0x683   : > { %1582 = vmatpush1.bf16.msra.mxu0 %v2335_v24 }
 0x684   : > { %1583 = vmatprep.subr.bf16.mxu0 %v2343_v18 }
 0x687   : > { %1584 = vmatpush1.bf16.msra.mxu0 %v2341_v20 }
 0x74d   : > { %v1323_v11 = vpop.f32.mrb[20].mxu0 }
 0x74e   : > { %v3052_v12 = vadd.f32 %v1323_v11, %v2931_v1  ;;  %v2177_v13 = vpop.f32.mrb[21].mxu0  ;;  %v2349_v1 = vld [vmem:[#allocation8 + $0x8c] ss:$16 sps:$4 sm:$0xff]  }
 0x74f   : > { %v1326_v14 = vpop.f32.mrb[22].mxu0  ;;  %1585 = vmatprep.subr.bf16.mxu0 %v2349_v1 }
 0x750   : > { %v2178_v15 = vpop.f32.mrb[23].mxu0  ;;  %v1329_v16 = vmul.f32 %v3052_v12, %v3052_v12  ;;  %1586 = vmatpush1.bf16.msra.mxu0 %v2347_v22 }
 0x751   : > { %1587 = vmatprep.subr.bf16.mxu0 %v2355_v25 }
 0x752   : > { %1330 = vadd.xlane.f32.xlu0 %v1329_v16 }
 0x754   : > { %1588 = vmatpush1.bf16.msra.mxu0 %v2353_v27 }
 0x755   : > { %1589 = vmatprep.subr.bf16.mxu0 %v2361_v29 }
 0x758   : > { %1590 = vmatpush1.bf16.msra.mxu0 %v2359_v31 }
 0x759   : > { %1591 = vmatprep.subr.bf16.mxu0 %v2367_v33 }
 0x75c   : > { %1592 = vmatpush1.bf16.msra.mxu0 %v2365_v35 }
 0x7df   : > { %v1331_v36 = vpop.xlane.xlu0 %1330 }
 0x7e0   : > { %v1332_v37 = vmul.f32 0.0078125, %v1331_v36 }
 0x7e2   : > { %v1333_v38 = vadd.f32 1e-05, %v1332_v37 }
 0x7e4   : > { %2402 = vrsqrt.f32 %v1333_v38 }
 0x7ee   : > { %v2403_v39 = vpop.eup %2402 }
 0x7ef   : > { %v1335_v41 = vmul.f32 %v2403_v39, %v3052_v12 }
 0x7f1   : > { %v1342_v42 = vmul.f32 %v1982_v40, %v1335_v41 }
 0x7f3   : > { %v1343_v43 = vpack.c.bf16 %v1342_v42, %v1342_v42 }
 0x7f5   : > { %1569 = vmatmul.mubr.bf16.vlgmr.msra.gmra.mrb[20].mxu1 %v1343_v43  ;;  %1610 = vmatmul.mubr.bf16.vlgmr.msra.gmra.mrb[24].mxu0 %v1343_v43 }
 0x7f6   : > { %2070 = vmatpush3.bf16.msra.mxu1 %v2369_v46 }
 0x7f7   : > { %2071 = vmatprep.subr.bf16.mxu1 %v2370_v47 }
 0x7fa   : > { %2072 = vmatpush3.bf16.msra.mxu1 %v2371_v48 }
 0x7fb   : > { %2073 = vmatprep.subr.bf16.mxu1 %v2372_v49 }
 0x7fe   : > { %2074 = vmatpush3.bf16.msra.mxu1 %v2373_v50 }
 0x7ff   : > { %2075 = vmatprep.subr.bf16.mxu1 %v2374_v51 }
 0x802   : > { %2076 = vmatpush3.bf16.msra.mxu1 %v2375_v52 }
 0x803   : > { %2077 = vmatprep.subr.bf16.mxu1 %v2376_v53 }
 0x806   : > { %2078 = vmatpush3.bf16.msra.mxu1 %v2377_v54 }
 0x807   : > { %2079 = vmatprep.subr.bf16.mxu1 %v2378_v0 }
 0x80a   : > { %2080 = vmatpush3.bf16.msra.mxu1 %v2379_v55 }
 0x80b   : > { %2081 = vmatprep.subr.bf16.mxu1 %v2380_v45 }
 0x80e   : > { %2082 = vmatpush3.bf16.msra.mxu1 %v2381_v56 }
 0x80f   : > { %2083 = vmatprep.subr.bf16.mxu1 %v2382_v57 }
 0x812   : > { %2084 = vmatpush3.bf16.msra.mxu1 %v2383_v58 }
 0x8c8   : > { %v1570_v59 = vpop.f32.mrb[20].mxu1  ;;  %v1611_v60 = vpop.f32.mrb[24].mxu0 }
 0x8c9   : > { %v1618_v61 = vsub.f32 0.0, %v1570_v59  ;;  %v1572_v62 = vpop.f32.mrb[21].mxu1  ;;  %v1613_v63 = vpop.f32.mrb[25].mxu0 }
 0x8ca   : > { %v1619_v2 = vsub.f32 0.0, %v1572_v62  ;;  %v1574_v3 = vpop.f32.mrb[22].mxu1  ;;  %v1615_v4 = vpop.f32.mrb[26].mxu0 }
 0x8cb   : > { %v1620_v5 = vmul.f32 1.442695, %v1618_v61  ;;  %v1575_v6 = vpop.f32.mrb[23].mxu1  ;;  %v1616_v7 = vpop.f32.mrb[27].mxu0 }
 0x8cc   : > { %v1622_v8 = vmul.f32 1.442695, %v1619_v2 }
 0x8cd   : > { %2404 = vpow2.f32 %v1620_v5 }
 0x8ce   : > { %2406 = vpow2.f32 %v1622_v8 }
 0x8d7   : > { %v2405_v9 = vpop.eup %2404 }
 0x8d8   : > { %v2407_v24 = vpop.eup %2406  ;;  %v1624_v11 = vadd.f32 1.0, %v2405_v9 }
 0x8d9   : > { %v1625_v13 = vadd.f32 1.0, %v2407_v24 }
 0x8da   : > { %2408 = vrcp.f32 %v1624_v11 }
 0x8db   : > { %2410 = vrcp.f32 %v1625_v13 }
 0x8e4   : > { %v2409_v14 = vpop.eup %2408 }
 0x8e5   : > { %v2411_v15 = vpop.eup %2410  ;;  %v1628_v16 = vmul.f32 %v2409_v14, %v1570_v59 }
 0x8e6   : > { %v1629_v17 = vmul.f32 %v2411_v15, %v1572_v62 }
 0x8e7   : > { %v1630_v18 = vmul.f32 %v1628_v16, %v1611_v60 }
 0x8e8   : > { %v1631_v19 = vmul.f32 %v1629_v17, %v1613_v63 }
 0x8e9   : > { %v1632_v21 = vpack.c.bf16 %v1630_v18, %v1630_v18 }
 0x8ea   : > { %v1633_v20 = vpack.c.bf16 %v1631_v19, %v1631_v19 }
 0x8ec   : > { %1794 = vmatprep.mubr.bf16.mxu1 %v1633_v20 }
 0x8ed   : > { %1795 = vmatmul.mubr.bf16.vlgmr.msra.gmra.mrb[24].mxu1 %v1632_v21 }
 0x9c0   : > { %v2085_v10 = vpop.f32.mrb[24].mxu1 }
 0x9c1   : > { %v2086_v22 = vpop.f32.mrb[25].mxu1 }
 0x9c2   : > { %v2087_v1 = vadd.f32 %v2086_v22, %v2085_v10  ;;  %v2088_v23 = vpop.f32.mrb[26].mxu1 }
 0x9c3   : > { %v2089_v25 = vpop.f32.mrb[27].mxu1 }
 0x9c4   : > { %v1797_v26 = vadd.f32 %v2087_v1, %v3052_v12 }
 0x9c6   : > { %1802 = vst [vmem:[%s405_s9] sm:$0xff] %v1797_v26 }
 0x9c7   : > { %2567 = shalt.err (!%p2564_p12)
}
 0x9c8   : > { %s2568_s3 = scalar_lea.hbm %s3067_s20, 128  ;;  %s2572_s18 = scalar_lea.hbm %s3144_s17, 256 }
 0x9c9   : > { %p2569_p13 = scmp.ne.s32.totalorder %s3067_s20, %s2568_s3  ;;  %p2573_p9 = scmp.lt.u32.totalorder %s3067_s20, %s3144_s17 }
 0x9ca   : > { %p2574_p4 = scmp.lt.u32.totalorder %s2572_s18, %s2568_s3  ;;  %p2576_p6 = scmp.lt.u32.totalorder %s2568_s3, %s3067_s20 }
 0x9cb   : > { %p2570_p3 = pnand %p2569_p13, %p3145_p0 }
 0x9cc   : > { %p2575_p8 = por %p2574_p4, %p2573_p9 }
 0x9cd   : > { %p2571_p7 = pneg %p2570_p3 }
 0x9ce   : > { %p2577_p2 = por %p2576_p6, %p2575_p8 }
 0x9d0   : > { %p2578_p5 = pnand %p2577_p2, %p2571_p7 }
 0x9d2   : > { %2581 = shalt.err (!%p2578_p5)
}
 0x9d3   : > { %2197 = dma.vmem_to_hbm [thread:$0]  (%p3145_p0), %s3069_s27, 128, %s3067_s20, %s1804_s15  }
 0x9d4 PF: > { %s1829_s24 = sand.u32 1, %s2616_s30   ;;  %p3146_p10 = scmp.ne.s32.totalorder %s3135_s28, 0 }
 0x9d5   : > { %p3147_p1 = scmp.ge.s32.totalorder %s2628_s12, 2  ;;  %s1830_s29 = scalar_lea.sflag [#allocation4], %s1829_s24 }
 0x9d7   : > { %p2217_p11 = pnand %p3147_p1, %p3146_p10 }
 0x9d9   : > { %2611 = dma.done.wait (!%p2217_p11), %s1830_s29, 128  }
 0x9da   : > { %2613 = vsyncadd (!%p2217_p11), %s1830_s29, 4294967168  ;;  %p24_p12 = scmp.ge.s32.totalorder %s2836_s19, 4   ;;  %s3148_s30 = smov %s2620_s10 }
 0x9db   : > { %s3149_s10 = smov %s2624_s11  ;;  %s3150_s11 = smov %s2847_s25 }
 0x9dc   : > { %s3151_s12 = smov %s2836_s19  ;;  %26 = sbr.rel (!%p24_p12) target bundleno = 10 (0xa), region = 117 }
 0x9e3   :  { %1835 = vsyncpa [#allocation3], 1 }
 0x9e4   :  { %1837 = vsyncpa [#allocation3 + $0x1], 1 }
 0x9e5   :  { %1838 = vsyncpa [#allocation6], 1 }
 0x9e6   :  { %1839 = vsyncpa [#allocation9], 1 }
 0x9e7   :  { %1840 = vsyncpa [#allocation4], 1 }
 0x9e8   :  { %1842 = vsyncpa [#allocation4 + $0x1], 1 }

</bundles_post_ra>
